<compile_context>
chip_gen: v7x
topology: tpu7x:2x2x1
jax: 0.10.0
libtpu: 0.0.40
codegen_flags: <defaults>
</compile_context>

<pallas_src>
import math

import jax
import jax.numpy as jnp
from jax.experimental import pallas as pl
from jax.experimental.pallas import tpu as pltpu


def _erf(x):
    # Abramowitz & Stegun 7.1.26 (|err| < 1.5e-7).  Kept (vs tanh-GELU) to stay close
    # to nn.GELU() exact semantics; the head MLP is tiny so the extra VALU ops are
    # irrelevant (accepted knowingly per review).
    a1, a2, a3, a4, a5 = 0.254829592, -0.284496736, 1.421413741, -1.453152027, 1.061405429
    p = 0.3275911
    sgn = jnp.where(x >= 0.0, 1.0, -1.0)
    ax = jnp.abs(x)
    t = 1.0 / (1.0 + p * ax)
    poly = ((((a5 * t + a4) * t + a3) * t + a2) * t + a1) * t
    return sgn * (1.0 - poly * jnp.exp(-ax * ax))


def _gelu_exact(x):
    return 0.5 * x * (1.0 + _erf(x / math.sqrt(2.0)))


def _layer_norm(z, g, b, eps=1e-5):
    mu = jnp.mean(z, axis=-1, keepdims=True)
    var = jnp.mean((z - mu) ** 2, axis=-1, keepdims=True)
    return (z - mu) * jax.lax.rsqrt(var + eps) * g + b


def _make_kernel(S, D, H, L):
    dh = D // H
    scale = 1.0 / math.sqrt(dh)
    bf16 = jnp.bfloat16

    def kernel(x_ref, mkey_ref, mrow_ref,
               wqkv_ref, bqkv_ref, wo_ref, bo_ref,
               ln1g_ref, ln1b_ref, ln2g_ref, ln2b_ref,
               w1_ref, b1_ref, w2_ref, b2_ref,
               wout1_ref, bout1_ref, wout2_ref, bout2_ref,
               out_ref, x_vmem):
        l = pl.program_id(1)

        # Load this batch row's token embeddings into the carried activation slab.
        @pl.when(l == 0)
        def _init():
            x_vmem[...] = x_ref[0]                      # (S, D) f32

        x = x_vmem[...]                                 # (S, D) f32
        # src_key_padding_mask: additive -1e30 on padded keys (kept in f32).
        key_bias = (1.0 - mkey_ref[0]) * (-1e30)        # (1, S) f32

        # ---------------- encoder layer l (post-norm, eval) ----------------
        # fused QKV projection: one (S,D)x(D,3D) bf16 matmul, f32 accumulate.
        xb = x.astype(bf16)
        qkv = jnp.dot(xb, wqkv_ref[0],
                      preferred_element_type=jnp.float32) + bqkv_ref[0]   # (S, 3D)

        # head-major tensors (H, S, dh) built from static lane slices.
        def heads(base):
            return jnp.stack(
                [qkv[:, base + h * dh: base + (h + 1) * dh] for h in range(H)], axis=0)

        qh = heads(0).astype(bf16)
        kh = heads(D).astype(bf16)
        vh = heads(2 * D).astype(bf16)

        # one batched dot_general per layer for scores and for P@V.
        sc = jnp.einsum('hqd,hkd->hqk', qh, kh,
                        preferred_element_type=jnp.float32) * scale       # (H, S, S)
        sc = sc + key_bias[None, :, :]
        sc = sc - jnp.max(sc, axis=-1, keepdims=True)
        p = jnp.exp(sc)
        # EUP reciprocal instead of VALU divide.
        p = p * pl.reciprocal(jnp.sum(p, axis=-1, keepdims=True), approx=True)
        ctx_h = jnp.einsum('hqk,hkd->hqd', p.astype(bf16), vh,
                           preferred_element_type=jnp.float32)            # (H, S, dh)
        ctx = jnp.concatenate([ctx_h[h] for h in range(H)], axis=-1)      # (S, D)

        attn = jnp.dot(ctx.astype(bf16), wo_ref[0],
                       preferred_element_type=jnp.float32) + bo_ref[0]
        x = _layer_norm(x + attn, ln1g_ref[0], ln1b_ref[0])               # f32

        h1 = jnp.dot(x.astype(bf16), w1_ref[0],
                     preferred_element_type=jnp.float32) + b1_ref[0]
        h1 = jnp.maximum(h1, 0.0)                                         # ReLU
        ff = jnp.dot(h1.astype(bf16), w2_ref[0],
                     preferred_element_type=jnp.float32) + b2_ref[0]
        x = _layer_norm(x + ff, ln2g_ref[0], ln2b_ref[0])
        x_vmem[...] = x

        # --------- last layer step for this batch row: pool + head MLP ---------
        @pl.when(l == L - 1)
        def _finalize():
            mrow = mrow_ref[0]                                            # (S, 1)
            summed = jnp.sum(x * mrow, axis=0, keepdims=True)             # (1, D)
            # NOTE: fully-padded rows clamp count to 1 (PyTorch would produce NaN
            # through MultiheadAttention for fully-masked queries) — edge case kept.
            cnt = jnp.maximum(jnp.sum(mrow, axis=0, keepdims=True), 1.0)  # (1, 1)
            pooled = summed * pl.reciprocal(cnt, approx=True)             # (1, D)

            hmid = jnp.dot(pooled.astype(bf16), wout1_ref[...],
                           preferred_element_type=jnp.float32) + bout1_ref[...]
            hmid = _gelu_exact(hmid)
            out = jnp.dot(hmid.astype(bf16), wout2_ref[...],
                          preferred_element_type=jnp.float32) + bout2_ref[...]
            out_ref[0] = out                                              # (1, O)

    return kernel


def setformer_forward(x_ids, params, *, num_heads, padding_idx):
    emb = params["emb"]
    B, S = x_ids.shape
    D = emb.shape[1]
    L = params["wqkv"].shape[0]
    F = params["w1"].shape[2]
    O = params["wout2"].shape[1]
    H = num_heads

    # Glue in plain JAX: padding mask (two layouts to avoid in-kernel transposes)
    # and the frozen-embedding gather (data-dependent vocab lookup).
    valid = (x_ids != padding_idx).astype(jnp.float32)          # (B, S)
    mkey = valid.reshape(B, 1, S)                               # key-padding bias layout
    mrow = valid.reshape(B, S, 1)                               # row-mask / pooling layout
    x3 = jnp.take(emb, x_ids, axis=0).astype(jnp.float32)       # (B, S, D)

    kernel = _make_kernel(S, D, H, L)

    def b_spec(shape):                       # per-batch blocks
        return pl.BlockSpec(shape, lambda b, l: (b, 0, 0))

    def l_spec(shape):                       # per-layer streamed weights
        return pl.BlockSpec(shape, lambda b, l: (l, 0, 0))

    def r_spec(shape):                       # resident head weights (2-D)
        return pl.BlockSpec(shape, lambda b, l: (0, 0))

    in_specs = [
        b_spec((1, S, D)),                   # x3
        b_spec((1, 1, S)),                   # mkey
        b_spec((1, S, 1)),                   # mrow
        l_spec((1, D, 3 * D)),               # wqkv
        l_spec((1, 1, 3 * D)),               # bqkv
        l_spec((1, D, D)),                   # wo
        l_spec((1, 1, D)),                   # bo
        l_spec((1, 1, D)), l_spec((1, 1, D)),    # ln1g, ln1b
        l_spec((1, 1, D)), l_spec((1, 1, D)),    # ln2g, ln2b
        l_spec((1, D, F)), l_spec((1, 1, F)),    # w1, b1
        l_spec((1, F, D)), l_spec((1, 1, D)),    # w2, b2
        r_spec((D, 2 * D)), r_spec((1, 2 * D)),  # wout1, bout1
        r_spec((2 * D, O)), r_spec((1, O)),      # wout2, bout2
    ]
    out_spec = pl.BlockSpec((1, 1, O), lambda b, l: (b, 0, 0))

    args = (x3, mkey, mrow,
            params["wqkv"], params["bqkv"], params["wo"], params["bo"],
            params["ln1g"], params["ln1b"], params["ln2g"], params["ln2b"],
            params["w1"], params["b1"], params["w2"], params["b2"],
            params["wout1"], params["bout1"], params["wout2"], params["bout2"])

    # VMEM budget: one layer of streamed weights + one batch row of activations
    # (both double-buffered) + resident head weights + scratch + slack.
    def nbytes(a):
        return int(a.size) * jnp.dtype(a.dtype).itemsize

    per_layer = sum(nbytes(a) // L for a in args[3:15])
    per_batch = sum(nbytes(a) // B for a in args[0:3])
    resident = sum(nbytes(a) for a in args[15:19])
    vmem_limit = int(2 * (per_layer + per_batch) + resident + S * D * 4 + (16 << 20))
    vmem_limit = min(max(vmem_limit, 16 << 20), 100 << 20)

    out3 = pl.pallas_call(
        kernel,
        out_shape=jax.ShapeDtypeStruct((B, 1, O), jnp.float32),
        grid_spec=pltpu.PrefetchScalarGridSpec(
            num_scalar_prefetch=0,
            grid=(B, L),
            in_specs=in_specs,
            out_specs=out_spec,
            scratch_shapes=[pltpu.VMEM((S, D), jnp.float32)],   # carried activation
        ),
        compiler_params=pltpu.CompilerParams(
            dimension_semantics=("parallel", "arbitrary"),
            vmem_limit_bytes=vmem_limit),
    )(*args)
    return out3.reshape(B, O)


def init_params(key, vocab, D, H, L, O, F, pad_idx):
    keys = jax.random.split(key, 12)
    bf = jnp.bfloat16

    def nrm(k, shape, scale=0.02):
        return (scale * jax.random.normal(k, shape)).astype(jnp.float32)

    emb = nrm(keys[0], (vocab, D), 1.0)
    emb = emb.at[pad_idx].set(0.0)          # frozen word-vector table, zero pad row

    wq = nrm(keys[1], (L, D, D))
    wk = nrm(keys[2], (L, D, D))
    wv = nrm(keys[3], (L, D, D))

    params = dict(
        emb=emb,
        # matmul weights stored bf16 (MXU-native); biases / LN params stay f32.
        wqkv=jnp.concatenate([wq, wk, wv], axis=-1).astype(bf),     # (L, D, 3D)
        bqkv=jnp.zeros((L, 1, 3 * D), jnp.float32),
        wo=nrm(keys[4], (L, D, D)).astype(bf),
        bo=jnp.zeros((L, 1, D), jnp.float32),
        ln1g=jnp.ones((L, 1, D), jnp.float32), ln1b=jnp.zeros((L, 1, D), jnp.float32),
        ln2g=jnp.ones((L, 1, D), jnp.float32), ln2b=jnp.zeros((L, 1, D), jnp.float32),
        w1=nrm(keys[5], (L, D, F)).astype(bf), b1=jnp.zeros((L, 1, F), jnp.float32),
        w2=nrm(keys[6], (L, F, D)).astype(bf), b2=jnp.zeros((L, 1, D), jnp.float32),
        wout1=nrm(keys[7], (D, 2 * D)).astype(bf), bout1=nrm(keys[8], (1, 2 * D)),
        wout2=nrm(keys[9], (2 * D, O)).astype(bf), bout2=nrm(keys[10], (1, O)),
    )
    return params


if __name__ == "__main__":
    # Small shapes consistent with the module's forward:
    #   x: (batch_size=2, context_size=8) int token ids
    B, S = 2, 8
    D, H, L, O = 32, 4, 2, 16          # emb_dim, num_heads, num_layers, output_dim
    F = 8 * D                          # dim_feedforward = 8 * emb_dim
    VOCAB, PAD = 50, 0

    key = jax.random.PRNGKey(0)
    kp, kx = jax.random.split(key)
    params = init_params(kp, VOCAB, D, H, L, O, F, PAD)

    x_ids = jax.random.randint(kx, (B, S), minval=1, maxval=VOCAB)
    # pad the sequence tails to exercise the key-padding mask / masked pooling
    pos = jnp.arange(S)[None, :]
    lengths = jnp.array([[5], [7]])
    x_ids = jnp.where(pos < lengths, x_ids, PAD)

    out = setformer_forward(x_ids, params, num_heads=H, padding_idx=PAD)
    out = jax.block_until_ready(out)
    assert out.shape == (B, O) and out.dtype == jnp.float32
    assert bool(jnp.all(jnp.isfinite(out)))
    print("KERNEL_OK")
</pallas_src>

<mosaic_0001>
module attributes {stable_mosaic.version = 11 : i64} {
  func.func @kernel(%arg0: i32, %arg1: i32, %arg2: memref<1x8x32xf32, #tpu.memory_space<vmem>>, %arg3: memref<1x1x8xf32, #tpu.memory_space<vmem>>, %arg4: memref<1x8x1xf32, #tpu.memory_space<vmem>>, %arg5: memref<1x32x96xbf16, #tpu.memory_space<vmem>>, %arg6: memref<1x1x96xf32, #tpu.memory_space<vmem>>, %arg7: memref<1x32x32xbf16, #tpu.memory_space<vmem>>, %arg8: memref<1x1x32xf32, #tpu.memory_space<vmem>>, %arg9: memref<1x1x32xf32, #tpu.memory_space<vmem>>, %arg10: memref<1x1x32xf32, #tpu.memory_space<vmem>>, %arg11: memref<1x1x32xf32, #tpu.memory_space<vmem>>, %arg12: memref<1x1x32xf32, #tpu.memory_space<vmem>>, %arg13: memref<1x32x256xbf16, #tpu.memory_space<vmem>>, %arg14: memref<1x1x256xf32, #tpu.memory_space<vmem>>, %arg15: memref<1x256x32xbf16, #tpu.memory_space<vmem>>, %arg16: memref<1x1x32xf32, #tpu.memory_space<vmem>>, %arg17: memref<32x64xbf16, #tpu.memory_space<vmem>>, %arg18: memref<1x64xf32, #tpu.memory_space<vmem>>, %arg19: memref<64x16xbf16, #tpu.memory_space<vmem>>, %arg20: memref<1x16xf32, #tpu.memory_space<vmem>>, %arg21: memref<1x1x16xf32, #tpu.memory_space<vmem>>, %arg22: memref<8x32xf32, #tpu.memory_space<vmem>>) attributes {dimension_semantics = [#tpu.dimension_semantics<parallel>, #tpu.dimension_semantics<arbitrary>], iteration_bounds = array<i64: 2, 2>, scalar_prefetch = 0 : i64, scratch_operands = 1 : i64, tpu.core_type = #tpu.core_type<tc>, window_params = [{transform_indices = @transform_0, window_bounds = array<i64: 1, 8, 32>}, {transform_indices = @transform_1, window_bounds = array<i64: 1, 1, 8>}, {transform_indices = @transform_2, window_bounds = array<i64: 1, 8, 1>}, {transform_indices = @transform_3, window_bounds = array<i64: 1, 32, 96>}, {transform_indices = @transform_4, window_bounds = array<i64: 1, 1, 96>}, {transform_indices = @transform_5, window_bounds = array<i64: 1, 32, 32>}, {transform_indices = @transform_6, window_bounds = array<i64: 1, 1, 32>}, {transform_indices = @transform_7, window_bounds = array<i64: 1, 1, 32>}, {transform_indices = @transform_8, window_bounds = array<i64: 1, 1, 32>}, {transform_indices = @transform_9, window_bounds = array<i64: 1, 1, 32>}, {transform_indices = @transform_10, window_bounds = array<i64: 1, 1, 32>}, {transform_indices = @transform_11, window_bounds = array<i64: 1, 32, 256>}, {transform_indices = @transform_12, window_bounds = array<i64: 1, 1, 256>}, {transform_indices = @transform_13, window_bounds = array<i64: 1, 256, 32>}, {transform_indices = @transform_14, window_bounds = array<i64: 1, 1, 32>}, {pipeline_mode = #tpu.pipeline_mode<synchronous>, transform_indices = @transform_15, window_bounds = array<i64: 32, 64>}, {pipeline_mode = #tpu.pipeline_mode<synchronous>, transform_indices = @transform_16, window_bounds = array<i64: 1, 64>}, {pipeline_mode = #tpu.pipeline_mode<synchronous>, transform_indices = @transform_17, window_bounds = array<i64: 64, 16>}, {pipeline_mode = #tpu.pipeline_mode<synchronous>, transform_indices = @transform_18, window_bounds = array<i64: 1, 16>}, {transform_indices = @transform_19, window_bounds = array<i64: 1, 1, 16>}]} {
    %c0_i32 = arith.constant 0 : i32
    %0 = arith.cmpi eq, %arg1, %c0_i32 : i32
    %1 = arith.extui %0 : i1 to i32
    %c0_i32_0 = arith.constant 0 : i32
    %2 = arith.cmpi ne, %1, %c0_i32_0 : i32
    scf.if %2 {
      %c0_65 = arith.constant 0 : index
      %c0_66 = arith.constant 0 : index
      %c0_67 = arith.constant 0 : index
      %159 = vector.load %arg2[%c0_65, %c0_66, %c0_67] : memref<1x8x32xf32, #tpu.memory_space<vmem>>, vector<1x8x32xf32>
      %160 = vector.shape_cast %159 : vector<1x8x32xf32> to vector<8x32xf32>
      %c0_68 = arith.constant 0 : index
      %c0_69 = arith.constant 0 : index
      %161 = vector.load %arg22[%c0_68, %c0_69] : memref<8x32xf32, #tpu.memory_space<vmem>>, vector<8x32xf32>
      tpu.vector_store %arg22[%c0_68, %c0_69], %160 {strides = array<i32>} : memref<8x32xf32, #tpu.memory_space<vmem>>, vector<8x32xf32>,
    } else {
    }
    %c0 = arith.constant 0 : index
    %c0_1 = arith.constant 0 : index
    %3 = vector.load %arg22[%c0, %c0_1] : memref<8x32xf32, #tpu.memory_space<vmem>>, vector<8x32xf32>
    %c0_2 = arith.constant 0 : index
    %c0_3 = arith.constant 0 : index
    %c0_4 = arith.constant 0 : index
    %4 = vector.load %arg3[%c0_2, %c0_3, %c0_4] : memref<1x1x8xf32, #tpu.memory_space<vmem>>, vector<1x1x8xf32>
    %5 = vector.shape_cast %4 : vector<1x1x8xf32> to vector<1x8xf32>
    %cst = arith.constant 1.000000e+00 : f32
    %6 = vector.broadcast %cst : f32 to vector<1x8xf32>
    %7 = arith.subf %6, %5 : vector<1x8xf32>
    %cst_5 = arith.constant -1.000000e+30 : f32
    %8 = vector.broadcast %cst_5 : f32 to vector<1x8xf32>
    %9 = arith.mulf %7, %8 : vector<1x8xf32>
    %10 = arith.truncf %3 : vector<8x32xf32> to vector<8x32xbf16>
    %c0_6 = arith.constant 0 : index
    %c0_7 = arith.constant 0 : index
    %c0_8 = arith.constant 0 : index
    %11 = vector.load %arg5[%c0_6, %c0_7, %c0_8] : memref<1x32x96xbf16, #tpu.memory_space<vmem>>, vector<1x32x96xbf16>
    %12 = vector.shape_cast %11 : vector<1x32x96xbf16> to vector<32x96xbf16>
    %cst_9 = arith.constant dense<0.000000e+00> : vector<8x96xf32>
    %13 = tpu.matmul %10, %12, %cst_9 {dimension_numbers = #tpu.dot_dimension_numbers<[1], [0], [0], [1], [0, 0, 1, 1], [], []>} : vector<8x32xbf16>, vector<32x96xbf16>, vector<8x96xf32> -> vector<8x96xf32>
    %c0_10 = arith.constant 0 : index
    %c0_11 = arith.constant 0 : index
    %c0_12 = arith.constant 0 : index
    %14 = vector.load %arg6[%c0_10, %c0_11, %c0_12] : memref<1x1x96xf32, #tpu.memory_space<vmem>>, vector<1x1x96xf32>
    %15 = vector.shape_cast %14 : vector<1x1x96xf32> to vector<1x96xf32>
    %16 = vector.broadcast %15 : vector<1x96xf32> to vector<8x96xf32>
    %17 = arith.addf %13, %16 : vector<8x96xf32>
    %18 = vector.extract_strided_slice %17 {offsets = [0, 0], sizes = [8, 8], strides = [1, 1]} : vector<8x96xf32> to vector<8x8xf32>
    %19 = vector.extract_strided_slice %17 {offsets = [0, 8], sizes = [8, 8], strides = [1, 1]} : vector<8x96xf32> to vector<8x8xf32>
    %20 = vector.extract_strided_slice %17 {offsets = [0, 16], sizes = [8, 8], strides = [1, 1]} : vector<8x96xf32> to vector<8x8xf32>
    %21 = vector.extract_strided_slice %17 {offsets = [0, 24], sizes = [8, 8], strides = [1, 1]} : vector<8x96xf32> to vector<8x8xf32>
    %22 = vector.shape_cast %18 : vector<8x8xf32> to vector<1x8x8xf32>
    %23 = vector.shape_cast %19 : vector<8x8xf32> to vector<1x8x8xf32>
    %24 = vector.shape_cast %20 : vector<8x8xf32> to vector<1x8x8xf32>
    %25 = vector.shape_cast %21 : vector<8x8xf32> to vector<1x8x8xf32>
    %26 = tpu.concatenate %22, %23, %24, %25 in 0 : vector<1x8x8xf32>, vector<1x8x8xf32>, vector<1x8x8xf32>, vector<1x8x8xf32> -> vector<4x8x8xf32>
    %27 = arith.truncf %26 : vector<4x8x8xf32> to vector<4x8x8xbf16>
    %28 = vector.extract_strided_slice %17 {offsets = [0, 32], sizes = [8, 8], strides = [1, 1]} : vector<8x96xf32> to vector<8x8xf32>
    %29 = vector.extract_strided_slice %17 {offsets = [0, 40], sizes = [8, 8], strides = [1, 1]} : vector<8x96xf32> to vector<8x8xf32>
    %30 = vector.extract_strided_slice %17 {offsets = [0, 48], sizes = [8, 8], strides = [1, 1]} : vector<8x96xf32> to vector<8x8xf32>
    %31 = vector.extract_strided_slice %17 {offsets = [0, 56], sizes = [8, 8], strides = [1, 1]} : vector<8x96xf32> to vector<8x8xf32>
    %32 = vector.shape_cast %28 : vector<8x8xf32> to vector<1x8x8xf32>
    %33 = vector.shape_cast %29 : vector<8x8xf32> to vector<1x8x8xf32>
    %34 = vector.shape_cast %30 : vector<8x8xf32> to vector<1x8x8xf32>
    %35 = vector.shape_cast %31 : vector<8x8xf32> to vector<1x8x8xf32>
    %36 = tpu.concatenate %32, %33, %34, %35 in 0 : vector<1x8x8xf32>, vector<1x8x8xf32>, vector<1x8x8xf32>, vector<1x8x8xf32> -> vector<4x8x8xf32>
    %37 = arith.truncf %36 : vector<4x8x8xf32> to vector<4x8x8xbf16>
    %38 = vector.extract_strided_slice %17 {offsets = [0, 64], sizes = [8, 8], strides = [1, 1]} : vector<8x96xf32> to vector<8x8xf32>
    %39 = vector.extract_strided_slice %17 {offsets = [0, 72], sizes = [8, 8], strides = [1, 1]} : vector<8x96xf32> to vector<8x8xf32>
    %40 = vector.extract_strided_slice %17 {offsets = [0, 80], sizes = [8, 8], strides = [1, 1]} : vector<8x96xf32> to vector<8x8xf32>
    %41 = vector.extract_strided_slice %17 {offsets = [0, 88], sizes = [8, 8], strides = [1, 1]} : vector<8x96xf32> to vector<8x8xf32>
    %42 = vector.shape_cast %38 : vector<8x8xf32> to vector<1x8x8xf32>
    %43 = vector.shape_cast %39 : vector<8x8xf32> to vector<1x8x8xf32>
    %44 = vector.shape_cast %40 : vector<8x8xf32> to vector<1x8x8xf32>
    %45 = vector.shape_cast %41 : vector<8x8xf32> to vector<1x8x8xf32>
    %46 = tpu.concatenate %42, %43, %44, %45 in 0 : vector<1x8x8xf32>, vector<1x8x8xf32>, vector<1x8x8xf32>, vector<1x8x8xf32> -> vector<4x8x8xf32>
    %47 = arith.truncf %46 : vector<4x8x8xf32> to vector<4x8x8xbf16>
    "tpu.trace_start"() <{level = 10 : i32, message = "hqd,hkd->hqk"}> : () -> ()
    %cst_13 = arith.constant dense<0.000000e+00> : vector<4x8x8xf32>
    %48 = tpu.matmul %27, %37, %cst_13 {dimension_numbers = #tpu.dot_dimension_numbers<[2], [2], [1], [1], [0, 0, 0, 1, 1, 1], [0], [0]>} : vector<4x8x8xbf16>, vector<4x8x8xbf16>, vector<4x8x8xf32> -> vector<4x8x8xf32>
    "tpu.trace_stop"() : () -> ()
    %cst_14 = arith.constant 0.353553385 : f32
    %49 = vector.broadcast %cst_14 : f32 to vector<4x8x8xf32>
    %50 = arith.mulf %48, %49 : vector<4x8x8xf32>
    %51 = vector.shape_cast %9 : vector<1x8xf32> to vector<1x1x8xf32>
    %52 = vector.broadcast %51 : vector<1x1x8xf32> to vector<4x8x8xf32>
    %53 = arith.addf %50, %52 : vector<4x8x8xf32>
    %cst_15 = arith.constant dense<0xFF800000> : vector<4x8xf32>
    %54 = vector.multi_reduction <maximumf>, %53, %cst_15 [2] : vector<4x8x8xf32> to vector<4x8xf32>
    %55 = vector.shape_cast %54 : vector<4x8xf32> to vector<4x8x1xf32>
    %56 = vector.broadcast %55 : vector<4x8x1xf32> to vector<4x8x8xf32>
    %57 = arith.subf %53, %56 : vector<4x8x8xf32>
    %58 = math.exp %57 : vector<4x8x8xf32>
    %cst_16 = arith.constant dense<0.000000e+00> : vector<4x8xf32>
    %59 = vector.multi_reduction <add>, %58, %cst_16 [2] : vector<4x8x8xf32> to vector<4x8xf32>
    %60 = vector.shape_cast %59 : vector<4x8xf32> to vector<4x8x1xf32>
    %61 = tpu.reciprocal %60 {approx = true} : vector<4x8x1xf32> -> vector<4x8x1xf32>
    %62 = vector.broadcast %61 : vector<4x8x1xf32> to vector<4x8x8xf32>
    %63 = arith.mulf %58, %62 : vector<4x8x8xf32>
    %64 = arith.truncf %63 : vector<4x8x8xf32> to vector<4x8x8xbf16>
    "tpu.trace_start"() <{level = 10 : i32, message = "hqk,hkd->hqd"}> : () -> ()
    %cst_17 = arith.constant dense<0.000000e+00> : vector<4x8x8xf32>
    %65 = tpu.matmul %64, %47, %cst_17 {dimension_numbers = #tpu.dot_dimension_numbers<[2], [1], [1], [2], [0, 0, 0, 1, 1, 2], [0], [0]>} : vector<4x8x8xbf16>, vector<4x8x8xbf16>, vector<4x8x8xf32> -> vector<4x8x8xf32>
    "tpu.trace_stop"() : () -> ()
    %66 = vector.extract_strided_slice %65 {offsets = [0, 0, 0], sizes = [1, 8, 8], strides = [1, 1, 1]} : vector<4x8x8xf32> to vector<1x8x8xf32>
    %67 = vector.shape_cast %66 : vector<1x8x8xf32> to vector<8x8xf32>
    %68 = vector.extract_strided_slice %65 {offsets = [1, 0, 0], sizes = [1, 8, 8], strides = [1, 1, 1]} : vector<4x8x8xf32> to vector<1x8x8xf32>
    %69 = vector.shape_cast %68 : vector<1x8x8xf32> to vector<8x8xf32>
    %70 = vector.extract_strided_slice %65 {offsets = [2, 0, 0], sizes = [1, 8, 8], strides = [1, 1, 1]} : vector<4x8x8xf32> to vector<1x8x8xf32>
    %71 = vector.shape_cast %70 : vector<1x8x8xf32> to vector<8x8xf32>
    %72 = vector.extract_strided_slice %65 {offsets = [3, 0, 0], sizes = [1, 8, 8], strides = [1, 1, 1]} : vector<4x8x8xf32> to vector<1x8x8xf32>
    %73 = vector.shape_cast %72 : vector<1x8x8xf32> to vector<8x8xf32>
    %74 = tpu.concatenate %67, %69, %71, %73 in 1 : vector<8x8xf32>, vector<8x8xf32>, vector<8x8xf32>, vector<8x8xf32> -> vector<8x32xf32>
    %75 = arith.truncf %74 : vector<8x32xf32> to vector<8x32xbf16>
    %c0_18 = arith.constant 0 : index
    %c0_19 = arith.constant 0 : index
    %c0_20 = arith.constant 0 : index
    %76 = vector.load %arg7[%c0_18, %c0_19, %c0_20] : memref<1x32x32xbf16, #tpu.memory_space<vmem>>, vector<1x32x32xbf16>
    %77 = vector.shape_cast %76 : vector<1x32x32xbf16> to vector<32x32xbf16>
    %cst_21 = arith.constant dense<0.000000e+00> : vector<8x32xf32>
    %78 = tpu.matmul %75, %77, %cst_21 {dimension_numbers = #tpu.dot_dimension_numbers<[1], [0], [0], [1], [0, 0, 1, 1], [], []>} : vector<8x32xbf16>, vector<32x32xbf16>, vector<8x32xf32> -> vector<8x32xf32>
    %c0_22 = arith.constant 0 : index
    %c0_23 = arith.constant 0 : index
    %c0_24 = arith.constant 0 : index
    %79 = vector.load %arg8[%c0_22, %c0_23, %c0_24] : memref<1x1x32xf32, #tpu.memory_space<vmem>>, vector<1x1x32xf32>
    %80 = vector.shape_cast %79 : vector<1x1x32xf32> to vector<1x32xf32>
    %81 = vector.broadcast %80 : vector<1x32xf32> to vector<8x32xf32>
    %82 = arith.addf %78, %81 : vector<8x32xf32>
    %83 = arith.addf %3, %82 : vector<8x32xf32>
    %c0_25 = arith.constant 0 : index
    %c0_26 = arith.constant 0 : index
    %c0_27 = arith.constant 0 : index
    %84 = vector.load %arg9[%c0_25, %c0_26, %c0_27] : memref<1x1x32xf32, #tpu.memory_space<vmem>>, vector<1x1x32xf32>
    %85 = vector.shape_cast %84 : vector<1x1x32xf32> to vector<1x32xf32>
    %c0_28 = arith.constant 0 : index
    %c0_29 = arith.constant 0 : index
    %c0_30 = arith.constant 0 : index
    %86 = vector.load %arg10[%c0_28, %c0_29, %c0_30] : memref<1x1x32xf32, #tpu.memory_space<vmem>>, vector<1x1x32xf32>
    %87 = vector.shape_cast %86 : vector<1x1x32xf32> to vector<1x32xf32>
    %cst_31 = arith.constant dense<0.000000e+00> : vector<8xf32>
    %88 = vector.multi_reduction <add>, %83, %cst_31 [1] : vector<8x32xf32> to vector<8xf32>
    %89 = vector.shape_cast %88 : vector<8xf32> to vector<8x1xf32>
    %cst_32 = arith.constant 3.200000e+01 : f32
    %90 = vector.broadcast %cst_32 : f32 to vector<8x1xf32>
    %91 = arith.divf %89, %90 : vector<8x1xf32>
    %92 = vector.broadcast %91 : vector<8x1xf32> to vector<8x32xf32>
    %93 = arith.subf %83, %92 : vector<8x32xf32>
    %94 = arith.mulf %93, %93 : vector<8x32xf32>
    %cst_33 = arith.constant dense<0.000000e+00> : vector<8xf32>
    %95 = vector.multi_reduction <add>, %94, %cst_33 [1] : vector<8x32xf32> to vector<8xf32>
    %96 = vector.shape_cast %95 : vector<8xf32> to vector<8x1xf32>
    %cst_34 = arith.constant 3.200000e+01 : f32
    %97 = vector.broadcast %cst_34 : f32 to vector<8x1xf32>
    %98 = arith.divf %96, %97 : vector<8x1xf32>
    %99 = vector.broadcast %91 : vector<8x1xf32> to vector<8x32xf32>
    %100 = arith.subf %83, %99 : vector<8x32xf32>
    %cst_35 = arith.constant 9.99999974E-6 : f32
    %101 = vector.broadcast %cst_35 : f32 to vector<8x1xf32>
    %102 = arith.addf %98, %101 : vector<8x1xf32>
    %103 = math.rsqrt %102 : vector<8x1xf32>
    %104 = vector.broadcast %103 : vector<8x1xf32> to vector<8x32xf32>
    %105 = arith.mulf %100, %104 : vector<8x32xf32>
    %106 = vector.broadcast %85 : vector<1x32xf32> to vector<8x32xf32>
    %107 = arith.mulf %105, %106 : vector<8x32xf32>
    %108 = vector.broadcast %87 : vector<1x32xf32> to vector<8x32xf32>
    %109 = arith.addf %107, %108 : vector<8x32xf32>
    %110 = arith.truncf %109 : vector<8x32xf32> to vector<8x32xbf16>
    %c0_36 = arith.constant 0 : index
    %c0_37 = arith.constant 0 : index
    %c0_38 = arith.constant 0 : index
    %111 = vector.load %arg13[%c0_36, %c0_37, %c0_38] : memref<1x32x256xbf16, #tpu.memory_space<vmem>>, vector<1x32x256xbf16>
    %112 = vector.shape_cast %111 : vector<1x32x256xbf16> to vector<32x256xbf16>
    %cst_39 = arith.constant dense<0.000000e+00> : vector<8x256xf32>
    %113 = tpu.matmul %110, %112, %cst_39 {dimension_numbers = #tpu.dot_dimension_numbers<[1], [0], [0], [1], [0, 0, 1, 1], [], []>} : vector<8x32xbf16>, vector<32x256xbf16>, vector<8x256xf32> -> vector<8x256xf32>
    %c0_40 = arith.constant 0 : index
    %c0_41 = arith.constant 0 : index
    %c0_42 = arith.constant 0 : index
    %114 = vector.load %arg14[%c0_40, %c0_41, %c0_42] : memref<1x1x256xf32, #tpu.memory_space<vmem>>, vector<1x1x256xf32>
    %115 = vector.shape_cast %114 : vector<1x1x256xf32> to vector<1x256xf32>
    %116 = vector.broadcast %115 : vector<1x256xf32> to vector<8x256xf32>
    %117 = arith.addf %113, %116 : vector<8x256xf32>
    %cst_43 = arith.constant 0.000000e+00 : f32
    %118 = vector.broadcast %cst_43 : f32 to vector<8x256xf32>
    %119 = arith.maximumf %117, %118 : vector<8x256xf32>
    %120 = arith.truncf %119 : vector<8x256xf32> to vector<8x256xbf16>
    %c0_44 = arith.constant 0 : index
    %c0_45 = arith.constant 0 : index
    %c0_46 = arith.constant 0 : index
    %121 = vector.load %arg15[%c0_44, %c0_45, %c0_46] : memref<1x256x32xbf16, #tpu.memory_space<vmem>>, vector<1x256x32xbf16>
    %122 = vector.shape_cast %121 : vector<1x256x32xbf16> to vector<256x32xbf16>
    %cst_47 = arith.constant dense<0.000000e+00> : vector<8x32xf32>
    %123 = tpu.matmul %120, %122, %cst_47 {dimension_numbers = #tpu.dot_dimension_numbers<[1], [0], [0], [1], [0, 0, 1, 1], [], []>} : vector<8x256xbf16>, vector<256x32xbf16>, vector<8x32xf32> -> vector<8x32xf32>
    %c0_48 = arith.constant 0 : index
    %c0_49 = arith.constant 0 : index
    %c0_50 = arith.constant 0 : index
    %124 = vector.load %arg16[%c0_48, %c0_49, %c0_50] : memref<1x1x32xf32, #tpu.memory_space<vmem>>, vector<1x1x32xf32>
    %125 = vector.shape_cast %124 : vector<1x1x32xf32> to vector<1x32xf32>
    %126 = vector.broadcast %125 : vector<1x32xf32> to vector<8x32xf32>
    %127 = arith.addf %123, %126 : vector<8x32xf32>
    %128 = arith.addf %109, %127 : vector<8x32xf32>
    %c0_51 = arith.constant 0 : index
    %c0_52 = arith.constant 0 : index
    %c0_53 = arith.constant 0 : index
    %129 = vector.load %arg11[%c0_51, %c0_52, %c0_53] : memref<1x1x32xf32, #tpu.memory_space<vmem>>, vector<1x1x32xf32>
    %130 = vector.shape_cast %129 : vector<1x1x32xf32> to vector<1x32xf32>
    %c0_54 = arith.constant 0 : index
    %c0_55 = arith.constant 0 : index
    %c0_56 = arith.constant 0 : index
    %131 = vector.load %arg12[%c0_54, %c0_55, %c0_56] : memref<1x1x32xf32, #tpu.memory_space<vmem>>, vector<1x1x32xf32>
    %132 = vector.shape_cast %131 : vector<1x1x32xf32> to vector<1x32xf32>
    %cst_57 = arith.constant dense<0.000000e+00> : vector<8xf32>
    %133 = vector.multi_reduction <add>, %128, %cst_57 [1] : vector<8x32xf32> to vector<8xf32>
    %134 = vector.shape_cast %133 : vector<8xf32> to vector<8x1xf32>
    %cst_58 = arith.constant 3.200000e+01 : f32
    %135 = vector.broadcast %cst_58 : f32 to vector<8x1xf32>
    %136 = arith.divf %134, %135 : vector<8x1xf32>
    %137 = vector.broadcast %136 : vector<8x1xf32> to vector<8x32xf32>
    %138 = arith.subf %128, %137 : vector<8x32xf32>
    %139 = arith.mulf %138, %138 : vector<8x32xf32>
    %cst_59 = arith.constant dense<0.000000e+00> : vector<8xf32>
    %140 = vector.multi_reduction <add>, %139, %cst_59 [1] : vector<8x32xf32> to vector<8xf32>
    %141 = vector.shape_cast %140 : vector<8xf32> to vector<8x1xf32>
    %cst_60 = arith.constant 3.200000e+01 : f32
    %142 = vector.broadcast %cst_60 : f32 to vector<8x1xf32>
    %143 = arith.divf %141, %142 : vector<8x1xf32>
    %144 = vector.broadcast %136 : vector<8x1xf32> to vector<8x32xf32>
    %145 = arith.subf %128, %144 : vector<8x32xf32>
    %cst_61 = arith.constant 9.99999974E-6 : f32
    %146 = vector.broadcast %cst_61 : f32 to vector<8x1xf32>
    %147 = arith.addf %143, %146 : vector<8x1xf32>
    %148 = math.rsqrt %147 : vector<8x1xf32>
    %149 = vector.broadcast %148 : vector<8x1xf32> to vector<8x32xf32>
    %150 = arith.mulf %145, %149 : vector<8x32xf32>
    %151 = vector.broadcast %130 : vector<1x32xf32> to vector<8x32xf32>
    %152 = arith.mulf %150, %151 : vector<8x32xf32>
    %153 = vector.broadcast %132 : vector<1x32xf32> to vector<8x32xf32>
    %154 = arith.addf %152, %153 : vector<8x32xf32>
    %c0_62 = arith.constant 0 : index
    %c0_63 = arith.constant 0 : index
    %155 = vector.load %arg22[%c0_62, %c0_63] : memref<8x32xf32, #tpu.memory_space<vmem>>, vector<8x32xf32>
    tpu.vector_store %arg22[%c0_62, %c0_63], %154 {strides = array<i32>} : memref<8x32xf32, #tpu.memory_space<vmem>>, vector<8x32xf32>,
    %c1_i32 = arith.constant 1 : i32
    %156 = arith.cmpi eq, %arg1, %c1_i32 : i32
    %157 = arith.extui %156 : i1 to i32
    %c0_i32_64 = arith.constant 0 : i32
    %158 = arith.cmpi ne, %157, %c0_i32_64 : i32
    scf.if %158 {
      %c0_65 = arith.constant 0 : index
      %c0_66 = arith.constant 0 : index
      %c0_67 = arith.constant 0 : index
      %159 = vector.load %arg4[%c0_65, %c0_66, %c0_67] : memref<1x8x1xf32, #tpu.memory_space<vmem>>, vector<1x8x1xf32>
      %160 = vector.shape_cast %159 : vector<1x8x1xf32> to vector<8x1xf32>
      %161 = vector.broadcast %160 : vector<8x1xf32> to vector<8x32xf32>
      %162 = arith.mulf %154, %161 : vector<8x32xf32>
      %cst_68 = arith.constant dense<0.000000e+00> : vector<32xf32>
      %163 = vector.multi_reduction <add>, %162, %cst_68 [0] : vector<8x32xf32> to vector<32xf32>
      %164 = vector.shape_cast %163 : vector<32xf32> to vector<1x32xf32>
      %cst_69 = arith.constant dense<0.000000e+00> : vector<1xf32>
      %165 = vector.multi_reduction <add>, %160, %cst_69 [0] : vector<8x1xf32> to vector<1xf32>
      %166 = vector.shape_cast %165 : vector<1xf32> to vector<1x1xf32>
      %cst_70 = arith.constant 1.000000e+00 : f32
      %167 = vector.broadcast %cst_70 : f32 to vector<1x1xf32>
      %168 = arith.maximumf %166, %167 : vector<1x1xf32>
      %169 = tpu.reciprocal %168 {approx = true} : vector<1x1xf32> -> vector<1x1xf32>
      %170 = vector.broadcast %169 : vector<1x1xf32> to vector<1x32xf32>
      %171 = arith.mulf %164, %170 : vector<1x32xf32>
      %172 = arith.truncf %171 : vector<1x32xf32> to vector<1x32xbf16>
      %c0_71 = arith.constant 0 : index
      %c0_72 = arith.constant 0 : index
      %173 = vector.load %arg17[%c0_71, %c0_72] : memref<32x64xbf16, #tpu.memory_space<vmem>>, vector<32x64xbf16>
      %cst_73 = arith.constant dense<0.000000e+00> : vector<1x64xf32>
      %174 = tpu.matmul %172, %173, %cst_73 {dimension_numbers = #tpu.dot_dimension_numbers<[1], [0], [0], [1], [0, 0, 1, 1], [], []>} : vector<1x32xbf16>, vector<32x64xbf16>, vector<1x64xf32> -> vector<1x64xf32>
      %c0_74 = arith.constant 0 : index
      %c0_75 = arith.constant 0 : index
      %175 = vector.load %arg18[%c0_74, %c0_75] : memref<1x64xf32, #tpu.memory_space<vmem>>, vector<1x64xf32>
      %176 = arith.addf %174, %175 : vector<1x64xf32>
      %cst_76 = arith.constant 5.000000e-01 : f32
      %177 = vector.broadcast %cst_76 : f32 to vector<1x64xf32>
      %178 = arith.mulf %177, %176 : vector<1x64xf32>
      %cst_77 = arith.constant 1.41421354 : f32
      %179 = vector.broadcast %cst_77 : f32 to vector<1x64xf32>
      %180 = arith.divf %176, %179 : vector<1x64xf32>
      %cst_78 = arith.constant 0.000000e+00 : f32
      %181 = vector.broadcast %cst_78 : f32 to vector<1x64xf32>
      %182 = arith.cmpf oge, %180, %181 : vector<1x64xf32>
      %cst_79 = arith.constant 1.000000e+00 : f32
      %cst_80 = arith.constant -1.000000e+00 : f32
      %183 = vector.broadcast %cst_79 : f32 to vector<1x64xf32>
      %184 = vector.broadcast %cst_80 : f32 to vector<1x64xf32>
      %185 = arith.select %182, %183, %184 : vector<1x64xi1>, vector<1x64xf32>
      %186 = math.absf %180 : vector<1x64xf32>
      %cst_81 = arith.constant 0.327591091 : f32
      %187 = vector.broadcast %cst_81 : f32 to vector<1x64xf32>
      %188 = arith.mulf %187, %186 : vector<1x64xf32>
      %cst_82 = arith.constant 1.000000e+00 : f32
      %189 = vector.broadcast %cst_82 : f32 to vector<1x64xf32>
      %190 = arith.addf %189, %188 : vector<1x64xf32>
      %cst_83 = arith.constant 1.000000e+00 : f32
      %191 = vector.broadcast %cst_83 : f32 to vector<1x64xf32>
      %192 = arith.divf %191, %190 : vector<1x64xf32>
      %cst_84 = arith.constant 1.06140542 : f32
      %193 = vector.broadcast %cst_84 : f32 to vector<1x64xf32>
      %194 = arith.mulf %193, %192 : vector<1x64xf32>
      %cst_85 = arith.constant -1.45315206 : f32
      %195 = vector.broadcast %cst_85 : f32 to vector<1x64xf32>
      %196 = arith.addf %194, %195 : vector<1x64xf32>
      %197 = arith.mulf %196, %192 : vector<1x64xf32>
      %cst_86 = arith.constant 1.42141378 : f32
      %198 = vector.broadcast %cst_86 : f32 to vector<1x64xf32>
      %199 = arith.addf %197, %198 : vector<1x64xf32>
      %200 = arith.mulf %199, %192 : vector<1x64xf32>
      %cst_87 = arith.constant -0.284496725 : f32
      %201 = vector.broadcast %cst_87 : f32 to vector<1x64xf32>
      %202 = arith.addf %200, %201 : vector<1x64xf32>
      %203 = arith.mulf %202, %192 : vector<1x64xf32>
      %cst_88 = arith.constant 0.254829586 : f32
      %204 = vector.broadcast %cst_88 : f32 to vector<1x64xf32>
      %205 = arith.addf %203, %204 : vector<1x64xf32>
      %206 = arith.mulf %205, %192 : vector<1x64xf32>
      %cst_89 = arith.constant 0.000000e+00 : f32
      %207 = vector.broadcast %cst_89 : f32 to vector<1x64xf32>
      %208 = arith.subf %207, %186 : vector<1x64xf32>
      %209 = arith.mulf %208, %186 : vector<1x64xf32>
      %210 = math.exp %209 : vector<1x64xf32>
      %211 = arith.mulf %206, %210 : vector<1x64xf32>
      %cst_90 = arith.constant 1.000000e+00 : f32
      %212 = vector.broadcast %cst_90 : f32 to vector<1x64xf32>
      %213 = arith.subf %212, %211 : vector<1x64xf32>
      %214 = arith.mulf %185, %213 : vector<1x64xf32>
      %cst_91 = arith.constant 1.000000e+00 : f32
      %215 = vector.broadcast %cst_91 : f32 to vector<1x64xf32>
      %216 = arith.addf %215, %214 : vector<1x64xf32>
      %217 = arith.mulf %178, %216 : vector<1x64xf32>
      %218 = arith.truncf %217 : vector<1x64xf32> to vector<1x64xbf16>
      %c0_92 = arith.constant 0 : index
      %c0_93 = arith.constant 0 : index
      %219 = vector.load %arg19[%c0_92, %c0_93] : memref<64x16xbf16, #tpu.memory_space<vmem>>, vector<64x16xbf16>
      %cst_94 = arith.constant dense<0.000000e+00> : vector<1x16xf32>
      %220 = tpu.matmul %218, %219, %cst_94 {dimension_numbers = #tpu.dot_dimension_numbers<[1], [0], [0], [1], [0, 0, 1, 1], [], []>} : vector<1x64xbf16>, vector<64x16xbf16>, vector<1x16xf32> -> vector<1x16xf32>
      %c0_95 = arith.constant 0 : index
      %c0_96 = arith.constant 0 : index
      %221 = vector.load %arg20[%c0_95, %c0_96] : memref<1x16xf32, #tpu.memory_space<vmem>>, vector<1x16xf32>
      %222 = arith.addf %220, %221 : vector<1x16xf32>
      %c0_97 = arith.constant 0 : index
      %c0_98 = arith.constant 0 : index
      %c0_99 = arith.constant 0 : index
      %223 = vector.load %arg21[%c0_97, %c0_98, %c0_99] : memref<1x1x16xf32, #tpu.memory_space<vmem>>, vector<1x1x16xf32>
      %224 = vector.shape_cast %223 : vector<1x1x16xf32> to vector<1x16xf32>
      %225 = vector.shape_cast %222 : vector<1x16xf32> to vector<1x1x16xf32>
      tpu.vector_store %arg21[%c0_97, %c0_98, %c0_99], %225 {strides = array<i32>} : memref<1x1x16xf32, #tpu.memory_space<vmem>>, vector<1x1x16xf32>,
    } else {
    }
    return
  }
  func.func @transform_0(%arg0: i32, %arg1: i32) -> (i32, i32, i32) {
    %c0_i32 = arith.constant 0 : i32
    %c0_i32_0 = arith.constant 0 : i32
    %c0_i32_1 = arith.constant 0 : i32
    return %arg0, %c0_i32, %c0_i32_0 : i32, i32, i32
  }
  func.func @transform_1(%arg0: i32, %arg1: i32) -> (i32, i32, i32) {
    %c0_i32 = arith.constant 0 : i32
    %c0_i32_0 = arith.constant 0 : i32
    %c0_i32_1 = arith.constant 0 : i32
    return %arg0, %c0_i32, %c0_i32_0 : i32, i32, i32
  }
  func.func @transform_2(%arg0: i32, %arg1: i32) -> (i32, i32, i32) {
    %c0_i32 = arith.constant 0 : i32
    %c0_i32_0 = arith.constant 0 : i32
    %c0_i32_1 = arith.constant 0 : i32
    return %arg0, %c0_i32, %c0_i32_0 : i32, i32, i32
  }
  func.func @transform_3(%arg0: i32, %arg1: i32) -> (i32, i32, i32) {
    %c0_i32 = arith.constant 0 : i32
    %c0_i32_0 = arith.constant 0 : i32
    %c0_i32_1 = arith.constant 0 : i32
    return %arg1, %c0_i32, %c0_i32_0 : i32, i32, i32
  }
  func.func @transform_4(%arg0: i32, %arg1: i32) -> (i32, i32, i32) {
    %c0_i32 = arith.constant 0 : i32
    %c0_i32_0 = arith.constant 0 : i32
    %c0_i32_1 = arith.constant 0 : i32
    return %arg1, %c0_i32, %c0_i32_0 : i32, i32, i32
  }
  func.func @transform_5(%arg0: i32, %arg1: i32) -> (i32, i32, i32) {
    %c0_i32 = arith.constant 0 : i32
    %c0_i32_0 = arith.constant 0 : i32
    %c0_i32_1 = arith.constant 0 : i32
    return %arg1, %c0_i32, %c0_i32_0 : i32, i32, i32
  }
  func.func @transform_6(%arg0: i32, %arg1: i32) -> (i32, i32, i32) {
    %c0_i32 = arith.constant 0 : i32
    %c0_i32_0 = arith.constant 0 : i32
    %c0_i32_1 = arith.constant 0 : i32
    return %arg1, %c0_i32, %c0_i32_0 : i32, i32, i32
  }
  func.func @transform_7(%arg0: i32, %arg1: i32) -> (i32, i32, i32) {
    %c0_i32 = arith.constant 0 : i32
    %c0_i32_0 = arith.constant 0 : i32
    %c0_i32_1 = arith.constant 0 : i32
    return %arg1, %c0_i32, %c0_i32_0 : i32, i32, i32
  }
  func.func @transform_8(%arg0: i32, %arg1: i32) -> (i32, i32, i32) {
    %c0_i32 = arith.constant 0 : i32
    %c0_i32_0 = arith.constant 0 : i32
    %c0_i32_1 = arith.constant 0 : i32
    return %arg1, %c0_i32, %c0_i32_0 : i32, i32, i32
  }
  func.func @transform_9(%arg0: i32, %arg1: i32) -> (i32, i32, i32) {
    %c0_i32 = arith.constant 0 : i32
    %c0_i32_0 = arith.constant 0 : i32
    %c0_i32_1 = arith.constant 0 : i32
    return %arg1, %c0_i32, %c0_i32_0 : i32, i32, i32
  }
  func.func @transform_10(%arg0: i32, %arg1: i32) -> (i32, i32, i32) {
    %c0_i32 = arith.constant 0 : i32
    %c0_i32_0 = arith.constant 0 : i32
    %c0_i32_1 = arith.constant 0 : i32
    return %arg1, %c0_i32, %c0_i32_0 : i32, i32, i32
  }
  func.func @transform_11(%arg0: i32, %arg1: i32) -> (i32, i32, i32) {
    %c0_i32 = arith.constant 0 : i32
    %c0_i32_0 = arith.constant 0 : i32
    %c0_i32_1 = arith.constant 0 : i32
    return %arg1, %c0_i32, %c0_i32_0 : i32, i32, i32
  }
  func.func @transform_12(%arg0: i32, %arg1: i32) -> (i32, i32, i32) {
    %c0_i32 = arith.constant 0 : i32
    %c0_i32_0 = arith.constant 0 : i32
    %c0_i32_1 = arith.constant 0 : i32
    return %arg1, %c0_i32, %c0_i32_0 : i32, i32, i32
  }
  func.func @transform_13(%arg0: i32, %arg1: i32) -> (i32, i32, i32) {
    %c0_i32 = arith.constant 0 : i32
    %c0_i32_0 = arith.constant 0 : i32
    %c0_i32_1 = arith.constant 0 : i32
    return %arg1, %c0_i32, %c0_i32_0 : i32, i32, i32
  }
  func.func @transform_14(%arg0: i32, %arg1: i32) -> (i32, i32, i32) {
    %c0_i32 = arith.constant 0 : i32
    %c0_i32_0 = arith.constant 0 : i32
    %c0_i32_1 = arith.constant 0 : i32
    return %arg1, %c0_i32, %c0_i32_0 : i32, i32, i32
  }
  func.func @transform_15(%arg0: i32, %arg1: i32) -> (i32, i32) {
    %c0_i32 = arith.constant 0 : i32
    %c0_i32_0 = arith.constant 0 : i32
    %c0_i32_1 = arith.constant 0 : i32
    return %c0_i32, %c0_i32_0 : i32, i32
  }
  func.func @transform_16(%arg0: i32, %arg1: i32) -> (i32, i32) {
    %c0_i32 = arith.constant 0 : i32
    %c0_i32_0 = arith.constant 0 : i32
    %c0_i32_1 = arith.constant 0 : i32
    return %c0_i32, %c0_i32_0 : i32, i32
  }
  func.func @transform_17(%arg0: i32, %arg1: i32) -> (i32, i32) {
    %c0_i32 = arith.constant 0 : i32
    %c0_i32_0 = arith.constant 0 : i32
    %c0_i32_1 = arith.constant 0 : i32
    return %c0_i32, %c0_i32_0 : i32, i32
  }
  func.func @transform_18(%arg0: i32, %arg1: i32) -> (i32, i32) {
    %c0_i32 = arith.constant 0 : i32
    %c0_i32_0 = arith.constant 0 : i32
    %c0_i32_1 = arith.constant 0 : i32
    return %c0_i32, %c0_i32_0 : i32, i32
  }
  func.func @transform_19(%arg0: i32, %arg1: i32) -> (i32, i32, i32) {
    %c0_i32 = arith.constant 0 : i32
    %c0_i32_0 = arith.constant 0 : i32
    %c0_i32_1 = arith.constant 0 : i32
    return %arg0, %c0_i32, %c0_i32_0 : i32, i32, i32
  }
}

</mosaic_0001>

<bundles_post_ra>
// kernel: tpu_custom_call.1
= control target key start
LH: loop header
LB: loop body
LE: loop exit
PB: predicated region body
PF: predicated region fallthrough
CT: control target
= control target key end

     0   :  { %s3180_s0 = inlined_call_operand.vmem [shape: f32[2,8,32], index: 0, kind: input, shape index: {}]   ;;  %s3181_s1 = inlined_call_operand.vmem [shape: f32[2,1,8], index: 1, kind: input, shape index: {}]   ;;  %s3182_s2 = inlined_call_operand.vmem [shape: f32[2,8,1], index: 2, kind: input, shape index: {}]   ;;  %s3183_s3 = inlined_call_operand.vmem [shape: bf16[2,32,96], index: 3, kind: input, shape index: {}]   ;;  %s3184_s4 = inlined_call_operand.vmem [shape: f32[2,1,96], index: 4, kind: input, shape index: {}]   ;;  %s3185_s5 = inlined_call_operand.vmem [shape: bf16[2,32,32], index: 5, kind: input, shape index: {}]   ;;  %s3186_s6 = inlined_call_operand.vmem [shape: f32[2,1,32], index: 6, kind: input, shape index: {}]   ;;  %s3187_s7 = inlined_call_operand.vmem [shape: f32[2,1,32], index: 7, kind: input, shape index: {}]   ;;  %s3188_s8 = inlined_call_operand.vmem [shape: f32[2,1,32], index: 8, kind: input, shape index: {}]   ;;  %s3189_s9 = inlined_call_operand.vmem [shape: f32[2,1,32], index: 9, kind: input, shape index: {}]   ;;  %s3190_s10 = inlined_call_operand.vmem [shape: f32[2,1,32], index: 10, kind: input, shape index: {}]   ;;  %s3191_s11 = inlined_call_operand.vmem [shape: bf16[2,32,256], index: 11, kind: input, shape index: {}]   ;;  %s3192_s12 = inlined_call_operand.vmem [shape: f32[2,1,256], index: 12, kind: input, shape index: {}]   ;;  %s3193_s13 = inlined_call_operand.vmem [shape: bf16[2,256,32], index: 13, kind: input, shape index: {}]   ;;  %s3194_s14 = inlined_call_operand.vmem [shape: f32[2,1,32], index: 14, kind: input, shape index: {}]   ;;  %s3195_s15 = inlined_call_operand.vmem [shape: bf16[32,64], index: 15, kind: input, shape index: {}]   ;;  %s3196_s16 = inlined_call_operand.vmem [shape: f32[1,64], index: 16, kind: input, shape index: {}]   ;;  %s3197_s17 = inlined_call_operand.vmem [shape: bf16[64,16], index: 17, kind: input, shape index: {}]   ;;  %s3198_s18 = inlined_call_operand.vmem [shape: f32[1,16], index: 18, kind: input, shape index: {}]   ;;  %s3199_s19 = inlined_call_operand.hbm [shape: f32[2,1,16], index: 19, kind: output, shape index: {}]  }
   0x1   :  { %3216 = sst [smem:[#allocation20_spill]] %s3180_s0 }
   0x2   :  { %3217 = sst [smem:[#allocation21_spill]] %s3181_s1 }
   0x3   :  { %3218 = sst [smem:[#allocation22_spill]] %s3182_s2 }
   0x4   :  { %3219 = sst [smem:[#allocation23_spill]] %s3183_s3 }
   0x5   :  { %3220 = sst [smem:[#allocation24_spill]] %s3185_s5 }
   0x6   :  { %3221 = sst [smem:[#allocation25_spill]] %s3194_s14 }
   0x7   :  { %3222 = sst [smem:[#allocation26_spill]] %s3195_s15 }
   0x8   :  { %3223 = sst [smem:[#allocation27_spill]] %s3196_s16 }
   0x9   :  { %3224 = sst [smem:[#allocation28_spill]] %s3197_s17 }
   0xa   :  { %3225 = sst [smem:[#allocation29_spill]] %s3198_s18 }
   0xb   :  { %3226 = sst [smem:[#allocation30_spill]] %s3199_s19 }
   0xc   :  { %24 = vsyncpa [#allocation4], 0 }
   0xd   :  { %26 = vsyncpa [#allocation4 + $0x1], 0  ;;  %s2781_s0 = smov 0   ;;  %s2783_s30 = smov 0  }
   0xe   :  { %s2785_s20 = smov 0   ;;  %s2787_s21 = smov 0  }
   0xf   :  { %s2789_s1 = smov 0   ;;  %s2791_s22 = smov 0  }
  0x10   :  { %s2793_s2 = smov 0   ;;  %s2795_s23 = smov 0  }
  0x11 LB: > { %3227 = sst [smem:[#allocation6_spill]] %s2635_s0  ;;  %s2213_s24 = sadd.s32 4294967295, %s2663_s23   ;;  %s2663_s23 = sphi %s2795_s23, %s32_s23   ;;  %s2659_s2 = sphi %s2793_s2, %s3279_s2   ;;  %s2655_s22 = sphi %s2791_s22, %s3282_s22   ;;  %s2651_s1 = sphi %s2789_s1, %s3277_s1   ;;  %s2647_s21 = sphi %s2787_s21, %s3276_s21   ;;  %s2643_s20 = sphi %s2785_s20, %s3275_s20   ;;  %s2639_s30 = sphi %s2783_s30, %s3281_s30   ;;  %s2635_s0 = sphi %s2781_s0, %s3280_s0  }
  0x12   : > { %3228 = sst [smem:[#allocation7_spill]] %s2643_s20  ;;  %s2214_s25 = sadd.s32 4294967294, %s2663_s23  }
  0x13   : > { %3229 = sst [smem:[#allocation8_spill]] %s2647_s21  ;;  %s41_s3 = sadd.s32 1, %s2655_s22 }
  0x14   : > { %3230 = sst [smem:[#allocation9_spill]] %s2651_s1  ;;  %p42_p0 = scmp.ge.s32.totalorder %s41_s3, 2 }
  0x15   : > { %3231 = sst [smem:[#allocation10_spill]] %s2655_s22  ;;  %s44_s26 = sadd.s32 1, %s2659_s2 }
  0x16   : > { %3232 = sst [smem:[#allocation11_spill]] %s2659_s2  ;;  %p535_p1 = scmp.ne.s32.totalorder %s2643_s20, %s2639_s30 }
  0x17   : > { %3233 = sst [smem:[#allocation12_spill]] %s2663_s23  ;;  %p536_p2 = scmp.eq.s32.totalorder %s2213_s24, 3 }
  0x18   : > { %s3284_s3 = smov (%p42_p0, %s41_s3), 0  ;;  %s3286_s26 = smov (!%p42_p0, %s44_s26), %s2659_s2 }
  0x19   : > { %3234 = sst [smem:[#allocation13_spill]] %s3284_s3  ;;  %p2830_p3 = por %p536_p2, %p535_p1 }
  0x1a   : > { %p541_p4 = scmp.ne.s32.totalorder %s2639_s30, %s2635_s0  ;;  %p46_p5 = scmp.ge.s32.totalorder %s3286_s26, 2 }
  0x1b   : > { %s3235_s27 = scalar_select %p2830_p3, 1, 0 }
  0x1c   : > { %p542_p6 = scmp.eq.s32.totalorder %s2214_s25, 3  ;;  %p2217_p7 = scmp.ge.s32.totalorder %s2663_s23, 1 }
  0x1d   : > { %3236 = sst [smem:[#allocation14_spill]] %s3235_s27  ;;  %p673_p8 = scmp.lt.s32.totalorder %s2663_s23, 5 }
  0x1e   : > { %s3288_s26 = smov (%p46_p5, %s3286_s26), 0  ;;  %p2840_p9 = por %p542_p6, %p541_p4 }
  0x1f   : > { %3237 = sst [smem:[#allocation15_spill]] %s3288_s26  ;;  %p674_p10 = pnand %p2217_p7, %p673_p8 }
  0x20   : > { %s3238_s28 = scalar_select %p2840_p9, 1, 0 }
  0x21   : > { %s522_s29 = ssub.s32 %s2659_s2, %s3288_s26  ;;  %s525_s24 = sadd.s32 1, %s2643_s20 }
  0x22   : > { %3239 = sst [smem:[#allocation16_spill]] %s3238_s28  ;;  %p523_p11 = scmp.eq.s32.totalorder %s522_s29, 0 }
  0x23   : > { %677 = sbr.rel (%p674_p10) target bundleno = 3315 (0xcf3), region = 96 }
  0x24   : > { %s2848_s3 = scalar_select %p523_p11, %s2643_s20, %s525_s24  }
  0x26   : > { %3240 = sst [smem:[#allocation17_spill]] %s2848_s3 }
  0x2a   : > { %p779_p12 = scmp.lt.s32.totalorder %s2651_s1, 1  ;;  %p790_p13 = scmp.lt.s32.totalorder %s2647_s21, 1 }
  0x2b   : > { %s3243_s0 = sld [smem:[#allocation20_spill]]  ;;  %s3246_s26 = sld [smem:[#allocation23_spill]] }
  0x2c   : > { %s2854_s22 = scalar_select %p779_p12, %s2651_s1, 1 }
  0x2d   : > { %s2857_s28 = scalar_select %p790_p13, %s2647_s21, 1 }
  0x2e   : > { %3241 = sst [smem:[#allocation18_spill]] %s2854_s22  ;;  %s2218_s29 = sshll.u32 %s2854_s22, 3 }
  0x2f   : > { %s3244_s1 = sld [smem:[#allocation22_spill]]  ;;  %s2284_s16 = sshll.u32 %s2857_s28, 4 }
  0x30   : > { %s3247_s5 = sld [smem:[#allocation24_spill]]  ;;  %s2286_s20 = sshll.u32 %s2857_s28, 5 }
  0x31   : > { %s782_s23 = scalar_lea.vmem %s3243_s0, %s2218_s29  ;;  %s794_s24 = scalar_lea.vmem %s3246_s26, %s2284_s16 }
  0x32   : > { %s2909_s19 = scalar_lea.vmem %s3191_s11, %s2286_s20  ;;  %s2226_s27 = sshll.u32 %s2857_s28, 1 }
  0x33   : > { %s2915_s15 = scalar_lea.vmem %s3192_s12, %s2226_s27  ;;  %s2287_s17 = sshll.u32 %s2857_s28, 7 }
  0x34   : > { %s2921_s14 = scalar_lea.vmem %s3193_s13, %s2287_s17  ;;  %s3250_s20 = sld [smem:[#allocation8_spill]] }
  0x35   : > { %s2870_s18 = scalar_lea.vmem %s3244_s1, %s2218_s29  ;;  %s3249_s1 = sand.u32 1, %s2639_s30  }
  0x36   : > { %3245 = sst [smem:[#allocation19_spill]] %s2870_s18  ;;  %s2883_s0 = scalar_lea.vmem %s3247_s5, %s2284_s16 }
  0x37   : > { %s3248_s16 = sld [smem:[#allocation25_spill]]  ;;  %s2929_s5 = scalar_lea.vmem [#allocation3], %s3249_s1 }
  0x3a   : > { %p2229_p0 = scmp.ne.s32.totalorder %s3250_s20, 0 }
  0x3b   : > { %v840_v0 = vld [vmem:[%s782_s23] sm:$0xff] (!%p2229_p0)  ;;  %vm841_vm0 = vcmask (!%p2229_p0), 261120  }
  0x3c   : > { %839 = sbr.rel (%p2229_p0) target bundleno = 67 (0x43), region = 100  ;;  %842 = vst.msk [vmem:[#allocation2] sm:$0xff] (!%p2229_p0), %vm841_vm0, %v840_v0 }
  0x3d   : > { %s834_s25 = scalar_lea.vmem %s3248_s16, %s2857_s28 }
  0x43 PF: > { %v2510_v1 = vld [vmem:[%s794_s24] sm:$0xff]   ;;  %v2665_v2 = vmov 0.0   ;;  %v2511_v3 = vld [vmem:[%s794_s24 + $0x8] sm:$0xff]   ;;  %vm2666_vm1 = vmmov 0   ;;  %vm871_vm2 = vcmask 261120   ;;  %s3251_s23 = scalar_lea.vmem %s3184_s4, %s2857_s28  ;;  %s2667_s24 = smov 104   ;;  %v1131_v27 = vlaneseq }
  0x44   : > { %2340 = vmatprep.subr.bf16.mxu0 %v2665_v2  ;;  %2360 = vmatprep.subr.bf16.mxu1 %v2665_v2  ;;  %v2936_v4 = vld [vmem:[#allocation2] sm:$0xff]  ;;  %s2668_s1 = smov 120   ;;  %s2669_s16 = smov 112   ;;  %vm932_vm3 = vcmask 64512   ;;  %vm1193_vm4 = vcmask 1043456   ;;  %vm1394_vm5 = vcmask 130048  }
  0x45   : > { %2341 = vmatpush3.bf16.msra.mxu0 %v2510_v1  ;;  %2344 = vmatprep.mubr.msk.bf16.mxu0 %vm2666_vm1, %v2665_v2  ;;  %v847_v5 = vpack.c.bf16 %v2936_v4, %v2936_v4  ;;  %v2230_v6 = vld [vmem:[%s3251_s23] ss:$0 sm:$0xff]  ;;  %s2670_s3 = smov 96   ;;  %s3252_s27 = sld [smem:[#allocation18_spill]]  ;;  %v2993_v30 = vshrl.u32 %v1131_v27, 7  ;;  %vm1396_vm6 = vcmask 195584  }
  0x46   : > { %2342 = vmatprep.subr.bf16.mxu0 %v2665_v2  ;;  %2362 = vmatprep.mubr.msk.bf16.mxu1 %vm2666_vm1, %v2665_v2  ;;  %s3253_s22 = sld [smem:[#allocation21_spill]]  ;;  %s2671_s2 = smov 64  }
  0x47   : > { %v1133_v32 = vsub.s32 0, %v2993_v30  ;;  %s2672_s20 = smov 8   ;;  %s2673_s18 = smov 16  }
  0x48   : > { %s2674_s21 = smov 24   ;;  %s3257_s29 = scalar_lea.vmem %s3188_s8, %s2857_s28 }
  0x49   : > { %2343 = vmatpush3.bf16.msra.mxu0 %v2511_v3 }
  0x4a   : > { %2348 = vmatprep.subr.bf16.mxu0 %v2665_v2 }
  0x4c   : > { %2345 = vmatmul.mubr.msk.bf16.vlgmr.msra.gmra.mrb[0].mxu0 %vm871_vm2, %v847_v5  ;;  %s3254_s26 = scalar_lea.vmem %s3253_s22, %s3252_s27 }
  0x4d   : > { %2350 = vmatprep.mubr.msk.bf16.mxu0 %vm2666_vm1, %v2665_v2  ;;  %v844_v28 = vld [vmem:[%s3254_s26] sm:$0x1]  ;;  %s3259_s26 = scalar_lea.vmem %s3189_s9, %s2857_s28 }
  0x4e   : > { %v845_v29 = vsub.f32 1.0, %v844_v28 }
  0x50   : > { %v846_v31 = vmul.f32 -1e+30, %v845_v29 }
  0x52   : > { %v1134_v33 = vrot.slane %v846_v31, %v1133_v32 }
 0x11f   : > { %v909_v7 = vpop.f32.mrb[0].mxu0 }
 0x120   : > { %v910_v8 = vadd.f32 %v2230_v6, %v909_v7  ;;  %v2346_v9 = vpop.f32.mrb[1].mxu0 }
 0x121   : > { %v912_v10 = vpop.f32.mrb[2].mxu0 }
 0x122   : > { %922 = vrot.lane.b32.xlu1 %v910_v8, %s2667_s24  ;;  %916 = vrot.lane.b32.xlu0 %v910_v8, %s2668_s1  ;;  %v2347_v11 = vpop.f32.mrb[3].mxu0  ;;  %v2952_v12 = vpack.c.bf16 %v910_v8, %v910_v8  ;;  %s3255_s24 = scalar_lea.vmem %s3186_s6, %s2857_s28 }
 0x126   : > { %919 = vrot.lane.b32.xlu0 %v910_v8, %s2669_s16  ;;  %930 = vrot.lane.b32.xlu1 %v2952_v12, %s2670_s3  ;;  %s3256_s16 = scalar_lea.vmem %s3187_s7, %s2857_s28 }
 0x194   : > { %v923_v13 = vpop.permute.xlu1 %922  ;;  %v917_v14 = vpop.permute.xlu0 %916 }
 0x195   : > { %v2955_v15 = vpack.c.bf16 %v917_v14, %v917_v14  ;;  %v2958_v18 = vpack.c.bf16 %v923_v13, %v923_v13 }
 0x197   : > { %980 = vrot.lane.b32.xlu0 %v2955_v15, %s2670_s3 }
 0x198   : > { %v920_v16 = vpop.permute.xlu0 %919  ;;  %v931_v17 = vpop.permute.xlu1 %930 }
 0x199   : > { %v2960_v19 = vpack.c.bf16 %v920_v16, %v920_v16  ;;  %v937_v20 = vsel %vm932_vm3, %v931_v17, 0 }
 0x19a   : > { %2349 = vmatpush3.bf16.xpose.msra.mxu0 %v937_v20 }
 0x19b   : > { %1078 = vrot.lane.b32.xlu0 %v2958_v18, %s2670_s3  ;;  %1029 = vrot.lane.b32.xlu1 %v2960_v19, %s2670_s3 }
 0x19c   : > { %2354 = vmatprep.subr.bf16.mxu0 %v2665_v2 }
 0x1a1   : > { %2351 = vmatmul.mubr.msk.bf16.vlgmr.msra.gmra.mrb[4].mxu0 %vm932_vm3, %v2952_v12 }
 0x1a2   : > { %2356 = vmatprep.mubr.msk.bf16.mxu0 %vm2666_vm1, %v2665_v2 }
 0x209   : > { %v981_v21 = vpop.permute.xlu0 %980 }
 0x20a   : > { %v986_v22 = vsel %vm932_vm3, %v981_v21, 0 }
 0x20b   : > { %2355 = vmatpush3.bf16.xpose.msra.mxu0 %v986_v22 }
 0x20c   : > { %2366 = vmatprep.subr.bf16.mxu0 %v2665_v2 }
 0x20d   : > { %v1030_v23 = vpop.permute.xlu1 %1029  ;;  %v1079_v25 = vpop.permute.xlu0 %1078 }
 0x20e   : > { %v1035_v24 = vsel %vm932_vm3, %v1030_v23, 0  ;;  %v1084_v26 = vsel %vm932_vm3, %v1079_v25, 0 }
 0x20f   : > { %2361 = vmatpush3.bf16.xpose.msra.mxu1 %v1035_v24 }
 0x210   : > { %2372 = vmatprep.subr.bf16.mxu1 %v2665_v2 }
 0x212   : > { %2357 = vmatmul.mubr.msk.bf16.vlgmr.msra.gmra.mrb[8].mxu0 %vm932_vm3, %v2955_v15 }
 0x213   : > { %2367 = vmatpush3.bf16.xpose.msra.mxu0 %v1084_v26  ;;  %2368 = vmatprep.mubr.msk.bf16.mxu0 %vm2666_vm1, %v2665_v2 }
 0x214   : > { %2378 = vmatprep.subr.bf16.mxu0 %v2665_v2 }
 0x216   : > { %2363 = vmatmul.mubr.msk.bf16.vlgmr.msra.gmra.mrb[0].mxu1 %vm932_vm3, %v2960_v19 }
 0x217   : > { %2374 = vmatprep.mubr.msk.bf16.mxu1 %vm2666_vm1, %v2665_v2 }
 0x21a   : > { %2369 = vmatmul.mubr.msk.bf16.vlgmr.msra.gmra.mrb[12].mxu0 %vm932_vm3, %v2958_v18 }
 0x21b   : > { %2380 = vmatprep.mubr.msk.bf16.mxu0 %vm2666_vm1, %v2665_v2 }
 0x274   : > { %v973_v34 = vpop.f32.mrb[4].mxu0 }
 0x275   : > { %v1126_v35 = vmul.f32 0.35355338, %v973_v34  ;;  %v2352_v36 = vpop.f32.mrb[5].mxu0 }
 0x276   : > { %v976_v37 = vpop.f32.mrb[6].mxu0 }
 0x277   : > { %v2353_v38 = vpop.f32.mrb[7].mxu0  ;;  %v1136_v39 = vadd.f32 %v1134_v33, %v1126_v35 }
 0x279   : > { %v1140_v40 = vsel %vm932_vm3, %v1136_v39, -inf }
 0x27a   : > { %1141 = vmax.xlane.f32.xlu1 %v1140_v40 }
 0x2e5   : > { %v1022_v41 = vpop.f32.mrb[8].mxu0 }
 0x2e6   : > { %v1127_v42 = vmul.f32 0.35355338, %v1022_v41  ;;  %v2358_v43 = vpop.f32.mrb[9].mxu0 }
 0x2e7   : > { %v1025_v44 = vpop.f32.mrb[10].mxu0 }
 0x2e8   : > { %v2359_v45 = vpop.f32.mrb[11].mxu0  ;;  %v1137_v46 = vadd.f32 %v1134_v33, %v1127_v42 }
 0x2e9   : > { %v1071_v47 = vpop.f32.mrb[0].mxu1 }
 0x2ea   : > { %v1128_v48 = vmul.f32 0.35355338, %v1071_v47  ;;  %v2364_v49 = vpop.f32.mrb[1].mxu1  ;;  %v1143_v50 = vsel %vm932_vm3, %v1137_v46, -inf }
 0x2eb   : > { %v1074_v51 = vpop.f32.mrb[2].mxu1  ;;  %1144 = vmax.xlane.f32.xlu0 %v1143_v50  ;;  %v2512_v50 = vld [vmem:[%s2883_s0] sm:$0xff]  }
 0x2ec   : > { %v2365_v52 = vpop.f32.mrb[3].mxu1  ;;  %v1138_v53 = vadd.f32 %v1134_v33, %v1128_v48  ;;  %v2513_v51 = vld [vmem:[%s2883_s0 + $0x8] sm:$0xff]  }
 0x2ed   : > { %v1120_v54 = vpop.f32.mrb[12].mxu0 }
 0x2ee   : > { %v1129_v55 = vmul.f32 0.35355338, %v1120_v54  ;;  %v2370_v56 = vpop.f32.mrb[13].mxu0  ;;  %v1146_v57 = vsel %vm932_vm3, %v1138_v53, -inf }
 0x2ef   : > { %1147 = vmax.xlane.f32.xlu0 %v1146_v57  ;;  %v1123_v58 = vpop.f32.mrb[14].mxu0 }
 0x2f0   : > { %v2371_v59 = vpop.f32.mrb[15].mxu0  ;;  %v1139_v60 = vadd.f32 %v1134_v33, %v1129_v55 }
 0x2f2   : > { %v1149_v61 = vsel %vm932_vm3, %v1139_v60, -inf }
 0x2f3   : > { %1150 = vmax.xlane.f32.xlu1 %v1149_v61 }
 0x304   : > { %1237 = vrot.lane.b32.xlu1 %v2955_v15, %s2671_s2 }
 0x305   : > { %1188 = vrot.lane.b32.xlu0 %v2952_v12, %s2671_s2 }
 0x307   : > { %v1142_v62 = vpop.xlane.xlu1 %1141 }
 0x308   : > { %v1152_v63 = vsub.f32 %v1136_v39, %v1142_v62 }
 0x30a   : > { %v1156_v0 = vmul.f32 1.442695, %v1152_v63 }
 0x30c   : > { %2536 = vpow2.f32 %v1156_v0 }
 0x316   : > { %v2537_v1 = vpop.eup %2536 }
 0x317   : > { %v1164_v3 = vsel %vm932_vm3, %v2537_v1, 0.0 }
 0x324   : > { %1165 = vadd.xlane.f32.xlu0 %v1164_v3 }
 0x378   : > { %v1145_v5 = vpop.xlane.xlu0 %1144 }
 0x379   : > { %v1153_v6 = vsub.f32 %v1137_v46, %v1145_v5 }
 0x37b   : > { %v1158_v7 = vmul.f32 1.442695, %v1153_v6 }
 0x37c   : > { %v1148_v8 = vpop.xlane.xlu0 %1147 }
 0x37d   : > { %2538 = vpow2.f32 %v1158_v7  ;;  %v1154_v9 = vsub.f32 %v1138_v53, %v1148_v8  ;;  %v2242_v8 = vld [vmem:[%s3255_s24] ss:$0 sm:$0xff] }
 0x37f   : > { %v1160_v10 = vmul.f32 1.442695, %v1154_v9 }
 0x380   : > { %v1189_v11 = vpop.permute.xlu0 %1188  ;;  %v1151_v13 = vpop.xlane.xlu1 %1150 }
 0x381   : > { %2540 = vpow2.f32 %v1160_v10  ;;  %v1195_v12 = vsel %vm1193_vm4, %v1189_v11, 0  ;;  %v1155_v14 = vsub.f32 %v1139_v60, %v1151_v13 }
 0x382   : > { %2373 = vmatpush3.bf16.msra.mxu1 %v1195_v12 }
 0x383   : > { %v1162_v15 = vmul.f32 1.442695, %v1155_v14  ;;  %2384 = vmatprep.subr.bf16.mxu1 %v2665_v2 }
 0x384   : > { %v1238_v16 = vpop.permute.xlu1 %1237 }
 0x385   : > { %2542 = vpow2.f32 %v1162_v15  ;;  %v1243_v17 = vsel %vm1193_vm4, %v1238_v16, 0 }
 0x386   : > { %2379 = vmatpush3.bf16.msra.mxu0 %v1243_v17 }
 0x387   : > { %v2539_v20 = vpop.eup %2538  ;;  %2390 = vmatprep.subr.bf16.mxu0 %v2665_v2 }
 0x388   : > { %v1167_v21 = vsel %vm932_vm3, %v2539_v20, 0.0 }
 0x389   : > { %1168 = vadd.xlane.f32.xlu1 %v1167_v21 }
 0x38b   : > { %v2541_v22 = vpop.eup %2540 }
 0x38c   : > { %v1170_v23 = vsel %vm932_vm3, %v2541_v22, 0.0 }
 0x38d   : > { %1171 = vadd.xlane.f32.xlu0 %v1170_v23  ;;  %v2516_v23 = vld [vmem:[%s2909_s19 + $0x4] ss:$8 sps:$4 sm:$0xff]  }
 0x38f   : > { %v2543_v24 = vpop.eup %2542 }
 0x390   : > { %v1173_v25 = vsel %vm932_vm3, %v2543_v24, 0.0 }
 0x391   : > { %1174 = vadd.xlane.f32.xlu1 %v1173_v25  ;;  %v2519_v25 = vld [vmem:[%s2909_s19 + $0x14] ss:$8 sps:$4 sm:$0xff]  }
 0x3a2   : > { %1285 = vrot.lane.b32.xlu1 %v2960_v19, %s2671_s2 }
 0x3a3   : > { %1333 = vrot.lane.b32.xlu0 %v2958_v18, %s2671_s2 }
 0x3b1   : > { %v1166_v26 = vpop.xlane.xlu0 %1165 }
 0x3b2   : > { %2544 = vrcp.f32 %v1166_v26  ;;  %v2675_v26 = vmov 0  }
 0x3bc   : > { %v2545_v27 = vpop.eup %2544 }
 0x3bd   : > { %v1180_v28 = vmul.f32 %v2545_v27, %v2537_v1  ;;  %v2520_v27 = vld [vmem:[%s2921_s14 + $0x40] sm:$0xff]  }
 0x3bf   : > { %v1184_v29 = vpack.c.bf16 %v1180_v28, %v1180_v28  ;;  %v2521_v28 = vld [vmem:[%s2921_s14] sm:$0xff]  }
 0x3c1   : > { %2375 = vmatmul.mubr.msk.bf16.vlgmr.msra.gmra.mrb[4].mxu1 %vm932_vm3, %v1184_v29  ;;  %v2522_v29 = vld [vmem:[%s2921_s14 + $0x48] sm:$0xff]  }
 0x3c2   : > { %2386 = vmatprep.mubr.msk.bf16.mxu1 %vm2666_vm1, %v2665_v2 }
 0x416   : > { %v1169_v31 = vpop.xlane.xlu1 %1168 }
 0x417   : > { %2546 = vrcp.f32 %v1169_v31  ;;  %v2523_v31 = vld [vmem:[%s2921_s14 + $0x8] sm:$0xff]  }
 0x41a   : > { %v1172_v33 = vpop.xlane.xlu0 %1171 }
 0x41b   : > { %2548 = vrcp.f32 %v1172_v33  ;;  %v2524_v33 = vld [vmem:[%s2921_s14 + $0x50] sm:$0xff]  }
 0x41e   : > { %v1175_v34 = vpop.xlane.xlu1 %1174  ;;  %v1334_v18 = vpop.permute.xlu0 %1333 }
 0x41f   : > { %2550 = vrcp.f32 %v1175_v34  ;;  %v1339_v41 = vsel %vm1193_vm4, %v1334_v18, 0  ;;  %v2525_v34 = vld [vmem:[%s2921_s14 + $0x10] sm:$0xff]   ;;  %v2529_v18 = vld [vmem:[%s2921_s14 + $0x20] sm:$0xff]  }
 0x421   : > { %v2547_v19 = vpop.eup %2546 }
 0x422   : > { %v1181_v35 = vmul.f32 %v2547_v19, %v2539_v20  ;;  %v1286_v36 = vpop.permute.xlu1 %1285  ;;  %v2526_v19 = vld [vmem:[%s2921_s14 + $0x58] sm:$0xff]  }
 0x423   : > { %v1291_v37 = vsel %vm1193_vm4, %v1286_v36, 0  ;;  %v2528_v36 = vld [vmem:[%s2921_s14 + $0x60] sm:$0xff]  }
 0x424   : > { %2385 = vmatpush3.bf16.msra.mxu1 %v1291_v37  ;;  %v1185_v38 = vpack.c.bf16 %v1181_v35, %v1181_v35  ;;  %v2527_v35 = vld [vmem:[%s2921_s14 + $0x18] sm:$0xff]   ;;  %v2530_v37 = vld [vmem:[%s2921_s14 + $0x68] sm:$0xff]  }
 0x425   : > { %v2549_v39 = vpop.eup %2548  ;;  %2396 = vmatprep.subr.bf16.mxu1 %v2665_v2 }
 0x426   : > { %v1182_v40 = vmul.f32 %v2549_v39, %v2541_v22  ;;  %2381 = vmatmul.mubr.msk.bf16.vlgmr.msra.gmra.mrb[16].mxu0 %vm932_vm3, %v1185_v38  ;;  %v2531_v38 = vld [vmem:[%s2921_s14 + $0x28] sm:$0xff]  }
 0x427   : > { %2391 = vmatpush3.bf16.msra.mxu0 %v1339_v41  ;;  %2392 = vmatprep.mubr.msk.bf16.mxu0 %vm2666_vm1, %v2665_v2 }
 0x428   : > { %v1186_v42 = vpack.c.bf16 %v1182_v40, %v1182_v40  ;;  %1536 = vmatprep.subr.bf16.mxu0 %v2516_v23 }
 0x429   : > { %v2551_v43 = vpop.eup %2550 }
 0x42a   : > { %v1183_v44 = vmul.f32 %v2551_v43, %v2543_v24  ;;  %2387 = vmatmul.mubr.msk.bf16.vlgmr.msra.gmra.mrb[8].mxu1 %vm932_vm3, %v1186_v42  ;;  %v2514_v24 = vld [vmem:[%s2909_s19] ss:$8 sps:$4 sm:$0xff]  }
 0x42b   : > { %2400 = vmatprep.mubr.msk.bf16.mxu1 %vm2666_vm1, %v2665_v2  ;;  %2397 = vmatpush3.bf16.msra.mxu1 %v2512_v50  ;;  %v2246_v43 = vld [vmem:[%s3256_s16] ss:$0 sm:$0xff]  ;;  %v2533_v50 = vld [vmem:[%s2921_s14 + $0x30] sm:$0xff]  }
 0x42c   : > { %v1187_v45 = vpack.c.bf16 %v1183_v44, %v1183_v44  ;;  %2398 = vmatprep.subr.bf16.mxu1 %v2665_v2 }
 0x42e   : > { %2393 = vmatmul.mubr.msk.bf16.vlgmr.msra.gmra.mrb[20].mxu0 %vm932_vm3, %v1187_v45  ;;  %v2247_v45 = vld [vmem:[%s3257_s29] ss:$0 sm:$0xff] }
 0x42f   : > { %2399 = vmatpush3.bf16.msra.mxu1 %v2513_v51  ;;  %1537 = vmatpush1.bf16.msra.mxu0 %v2514_v24  ;;  %v2534_v51 = vld [vmem:[%s2921_s14 + $0x78] sm:$0xff]  }
 0x430   : > { %1568 = vmatprep.mubr.bf16.mxu0 %v2675_v26  ;;  %1538 = vmatprep.subr.bf16.mxu0 %v2519_v25 }
 0x431   : > { %2310 = vmatprep.subr.bf16.mxu1 %v2520_v27 }
 0x494   : > { %v1231_v46 = vpop.f32.mrb[4].mxu1 }
 0x495   : > { %v2376_v47 = vpop.f32.mrb[5].mxu1 }
 0x496   : > { %v1234_v48 = vpop.f32.mrb[6].mxu1 }
 0x497   : > { %v2377_v49 = vpop.f32.mrb[7].mxu1 }
 0x498   : > { %v2532_v49 = vld [vmem:[%s2921_s14 + $0x70] sm:$0xff]  }
 0x4f9   : > { %v1279_v52 = vpop.f32.mrb[16].mxu0 }
 0x4fa   : > { %1382 = vrot.lane.b32.xlu1 %v1279_v52, %s2672_s20  ;;  %v2382_v53 = vpop.f32.mrb[17].mxu0  ;;  %v2535_v52 = vld [vmem:[%s2921_s14 + $0x38] sm:$0xff]  }
 0x4fb   : > { %v1282_v54 = vpop.f32.mrb[18].mxu0  ;;  %v1501_v53 = vld [vmem:[%s2915_s15] sm:$0x3] }
 0x4fc   : > { %v2383_v55 = vpop.f32.mrb[19].mxu0  ;;  %v1509_v54 = vsub.s32 1, %v2993_v30  ;;  %v2253_v30 = vld [vmem:[%s834_s25] ss:$0 sm:$0xff] }
 0x4fd   : > { %v1327_v56 = vpop.f32.mrb[8].mxu1  ;;  %v1506_v55 = vrot.slane %v1501_v53, %v1133_v32 }
 0x4fe   : > { %1386 = vrot.lane.b32.xlu0 %v1327_v56, %s2673_s18  ;;  %v2388_v57 = vpop.f32.mrb[9].mxu1  ;;  %v1510_v56 = vrot.slane %v1501_v53, %v1509_v54  ;;  %s3260_s18 = scalar_lea.vmem %s3190_s10, %s2857_s28 }
 0x4ff   : > { %v1330_v58 = vpop.f32.mrb[10].mxu1  ;;  %v2271_v24 = vld [vmem:[%s3260_s18] ss:$0 sm:$0xff] }
 0x500   : > { %v2389_v59 = vpop.f32.mrb[11].mxu1 }
 0x501   : > { %v1375_v60 = vpop.f32.mrb[20].mxu0 }
 0x502   : > { %1390 = vrot.lane.b32.xlu1 %v1375_v60, %s2674_s21  ;;  %v2394_v61 = vpop.f32.mrb[21].mxu0  ;;  %s3261_s21 = sld [smem:[#allocation8_spill]] }
 0x503   : > { %v1378_v2 = vpop.f32.mrb[22].mxu0 }
 0x504   : > { %v2395_v62 = vpop.f32.mrb[23].mxu0 }
 0x508   : > { %p2272_p1 = scmp.ne.s32.totalorder %s3261_s21, 1 }
 0x509   : > { %s3262_s0 = sld [smem:[#allocation19_spill]] (!%p2272_p1)  ;;  %vm1805_vm7 = vcmask (!%p2272_p1), 7168   ;;  %v2676_v27 = vmov (!%p2272_p1), 0   ;;  %s3263_s24 = sld [smem:[#allocation26_spill]] (!%p2272_p1)  ;;  %vm2678_vm8 = vmmov (!%p2272_p1), 0   ;;  %vm1944_vm10 = vcmask (!%p2272_p1), 523264  }
 0x50a   : > { %2556 = vset.pattern.permute.xlu0 (!%p2272_p1), %v2676_v27  ;;  %s3264_s27 = sld [smem:[#allocation28_spill]] (!%p2272_p1)  ;;  %s3265_s20 = sld [smem:[#allocation27_spill]] (!%p2272_p1)  ;;  %vm1988_vm11 = vcmask (!%p2272_p1), 122880  }
 0x50f   : > { %v1791_v26 = vld [vmem:[%s3262_s0] sm:$0xff] (!%p2272_p1)  ;;  %s3266_s0 = sld [smem:[#allocation29_spill]] (!%p2272_p1) }
 0x510   : > { %v2560_v53 = vld [vmem:[%s3264_s27 + $0x8] sm:$0xff] (!%p2272_p1)   ;;  %v2561_v54 = vld [vmem:[%s3264_s27 + $0x10] sm:$0xff] (!%p2272_p1)  }
 0x56c   : > { %v1383_v63 = vpop.permute.xlu1 %1382 }
 0x56d   : > { %v1393_v1 = vsel %vm932_vm3, %v1231_v46, %v1383_v63 }
 0x570   : > { %v1387_v0 = vpop.permute.xlu0 %1386 }
 0x571   : > { %v1395_v3 = vsel %vm1394_vm5, %v1393_v1, %v1387_v0 }
 0x574   : > { %v1391_v5 = vpop.permute.xlu1 %1390 }
 0x575   : > { %v1397_v6 = vsel %vm1396_vm6, %v1395_v3, %v1391_v5 }
 0x576   : > { %v1398_v7 = vpack.c.bf16 %v1397_v6, %v1397_v6 }
 0x578   : > { %2401 = vmatmul.mubr.msk.bf16.vlgmr.msra.gmra.mrb[12].mxu1 %vm871_vm2, %v1398_v7 }
 0x579   : > { %2311 = vmatpush3.bf16.msra.mxu1 %v2521_v28  ;;  %v1806_v28 = vsel (!%p2272_p1), %vm1805_vm7, %v1791_v26, 0.0 }
 0x57a   : > { %2312 = vmatprep.subr.bf16.mxu1 %v2522_v29  ;;  %v1807_v29 = vrot.slane (!%p2272_p1), %v1806_v28, 4 }
 0x57d   : > { %2313 = vmatpush3.bf16.msra.mxu1 %v2523_v31  ;;  %v1808_v31 = vadd.f32 (!%p2272_p1), %v1807_v29, %v1806_v28 }
 0x57e   : > { %2314 = vmatprep.subr.bf16.mxu1 %v2524_v33 }
 0x57f   : > { %v1809_v33 = vrot.slane (!%p2272_p1), %v1808_v31, 2 }
 0x581   : > { %2315 = vmatpush3.bf16.msra.mxu1 %v2525_v34  ;;  %v1810_v34 = vadd.f32 (!%p2272_p1), %v1809_v33, %v1808_v31 }
 0x582   : > { %2316 = vmatprep.subr.bf16.mxu1 %v2526_v19 }
 0x583   : > { %v1811_v19 = vrot.slane (!%p2272_p1), %v1810_v34, 1 }
 0x585   : > { %2317 = vmatpush3.bf16.msra.mxu1 %v2527_v35  ;;  %v2557_v35 = vld [vmem:[%s3263_s24] sm:$0xff] (!%p2272_p1)  }
 0x586   : > { %2318 = vmatprep.subr.bf16.mxu1 %v2528_v36  ;;  %v1812_v36 = vadd.f32 (!%p2272_p1), %v1811_v19, %v1810_v34 }
 0x589   : > { %2319 = vmatpush3.bf16.msra.mxu1 %v2529_v18  ;;  %v2677_v18 = vmov (!%p2272_p1), 0.0  }
 0x58a   : > { %2320 = vmatprep.subr.bf16.mxu1 %v2530_v37  ;;  %v1813_v37 = vmax.f32 (!%p2272_p1), %v1812_v36, 1.0 }
 0x58d   : > { %2321 = vmatpush3.bf16.msra.mxu1 %v2531_v38 }
 0x58e   : > { %2322 = vmatprep.subr.bf16.mxu1 %v2532_v49 }
 0x591   : > { %2323 = vmatpush3.bf16.msra.mxu1 %v2533_v50 }
 0x592   : > { %2324 = vmatprep.subr.bf16.mxu1 %v2534_v51 }
 0x595   : > { %2325 = vmatpush3.bf16.msra.mxu1 %v2535_v52  ;;  %v2559_v52 = vld [vmem:[%s3264_s27] sm:$0xff] (!%p2272_p1)  }
 0x596   : > { %2412 = vmatprep.subr.bf16.mxu1 (!%p2272_p1), %v2677_v18 }
 0x64b   : > { %v1459_v9 = vpop.f32.mrb[12].mxu1 }
 0x64c   : > { %v1460_v10 = vadd.f32 %v2242_v8, %v1459_v9  ;;  %v2402_v11 = vpop.f32.mrb[13].mxu1 }
 0x64d   : > { %v1462_v13 = vpop.f32.mrb[14].mxu1 }
 0x64e   : > { %v2403_v12 = vpop.f32.mrb[15].mxu1  ;;  %v1465_v14 = vadd.f32 %v1460_v10, %v2936_v4  ;;  %v2517_v4 = vld [vmem:[%s2909_s19 + $0x10] ss:$8 sps:$4 sm:$0xff]  }
 0x64f   : > { %1539 = vmatpush1.bf16.msra.mxu0 %v2517_v4 }
 0x650   : > { %v1468_v15 = vsel %vm871_vm2, %v1465_v14, 0.0  ;;  %2404 = vmatprep.subr.bf16.mxu0 (!%p2272_p1), %v2677_v18 }
 0x651   : > { %1469 = vadd.xlane.f32.xlu0 %v1468_v15 }
 0x6de   : > { %v1470_v16 = vpop.xlane.xlu0 %1469 }
 0x6df   : > { %v1472_v17 = vmul.f32 0.03125, %v1470_v16 }
 0x6e1   : > { %v1473_v20 = vsub.f32 %v1465_v14, %v1472_v17 }
 0x6e3   : > { %v1474_v21 = vmul.f32 %v1473_v20, %v1473_v20 }
 0x6e5   : > { %v1475_v22 = vsel %vm871_vm2, %v1474_v21, 0.0 }
 0x6e6   : > { %1476 = vadd.xlane.f32.xlu1 %v1475_v22  ;;  %v2270_v22 = vld [vmem:[%s3259_s26] ss:$0 sm:$0xff] }
 0x773   : > { %v1477_v39 = vpop.xlane.xlu1 %1476 }
 0x774   : > { %v1478_v40 = vmul.f32 0.03125, %v1477_v39  ;;  %v2558_v39 = vld [vmem:[%s3263_s24 + $0x8] sm:$0xff] (!%p2272_p1)  }
 0x776   : > { %v1479_v41 = vadd.f32 1e-05, %v1478_v40 }
 0x778   : > { %2552 = vrsqrt.f32 %v1479_v41 }
 0x782   : > { %v2553_v42 = vpop.eup %2552 }
 0x783   : > { %v1481_v44 = vmul.f32 %v2553_v42, %v1473_v20 }
 0x785   : > { %v1488_v46 = vmul.f32 %v2246_v43, %v1481_v44 }
 0x787   : > { %v1495_v47 = vadd.f32 %v2247_v45, %v1488_v46 }
 0x789   : > { %v1496_v48 = vpack.c.bf16 %v1495_v47, %v1495_v47 }
 0x78b   : > { %2252 = vmatmul.mubr.msk.bf16.vlgmr.msra.gmra.mrb[24].mxu0 %vm871_vm2, %v1496_v48 }
 0x78c   : > { %2405 = vmatpush3.bf16.msra.mxu0 (!%p2272_p1), %v2557_v35  ;;  %2408 = vmatprep.mubr.msk.bf16.mxu0 (!%p2272_p1), %vm2678_vm8, %v2677_v18 }
 0x78d   : > { %2406 = vmatprep.subr.bf16.mxu0 (!%p2272_p1), %v2677_v18 }
 0x790   : > { %2407 = vmatpush3.bf16.msra.mxu0 (!%p2272_p1), %v2558_v39 }
 0x85e   : > { %v1570_v57 = vpop.f32.mrb[24].mxu0 }
 0x85f   : > { %v1571_v58 = vadd.f32 %v1570_v57, %v1506_v55  ;;  %v1572_v59 = vpop.f32.mrb[25].mxu0  ;;  %v2562_v55 = vld [vmem:[%s3264_s27 + $0x18] sm:$0xff] (!%p2272_p1)  }
 0x860   : > { %v1573_v60 = vadd.f32 %v1572_v59, %v1510_v56  ;;  %v1574_v61 = vpop.f32.mrb[26].mxu0  ;;  %v1826_v56 = vld [vmem:[%s3265_s20] sm:$0x1] (!%p2272_p1) }
 0x861   : > { %v1577_v2 = vmax.f32 %v1571_v58, 0.0  ;;  %v1575_v62 = vpop.f32.mrb[27].mxu0 }
 0x862   : > { %v1578_v63 = vmax.f32 %v1573_v60, 0.0 }
 0x863   : > { %v1579_v1 = vpack.c.bf16 %v1577_v2, %v1577_v2 }
 0x864   : > { %v1580_v0 = vpack.c.bf16 %v1578_v63, %v1578_v63 }
 0x866   : > { %1748 = vmatprep.mubr.bf16.mxu1 %v1580_v0 }
 0x867   : > { %1749 = vmatmul.mubr.bf16.vlgmr.msra.gmra.mrb[16].mxu1 %v1579_v1 }
 0x868   : > { %2420 = vmatprep.mubr.msk.bf16.mxu1 (!%p2272_p1), %vm2678_vm8, %v2677_v18  ;;  %2413 = vmatpush3.bf16.msra.mxu1 (!%p2272_p1), %v2559_v52 }
 0x869   : > { %2414 = vmatprep.subr.bf16.mxu1 (!%p2272_p1), %v2677_v18 }
 0x86c   : > { %2415 = vmatpush3.bf16.msra.mxu1 (!%p2272_p1), %v2560_v53 }
 0x86d   : > { %2416 = vmatprep.subr.bf16.mxu1 (!%p2272_p1), %v2677_v18 }
 0x870   : > { %2417 = vmatpush3.bf16.msra.mxu1 (!%p2272_p1), %v2561_v54 }
 0x871   : > { %2418 = vmatprep.subr.bf16.mxu1 (!%p2272_p1), %v2677_v18 }
 0x874   : > { %2419 = vmatpush3.bf16.msra.mxu1 (!%p2272_p1), %v2562_v55 }
 0x93a   : > { %v2326_v3 = vpop.f32.mrb[16].mxu1 }
 0x93b   : > { %v2327_v32 = vpop.f32.mrb[17].mxu1 }
 0x93c   : > { %v2328_v5 = vadd.f32 %v2327_v32, %v2326_v3  ;;  %v2329_v6 = vpop.f32.mrb[18].mxu1 }
 0x93d   : > { %v2330_v7 = vpop.f32.mrb[19].mxu1 }
 0x93e   : > { %v1751_v8 = vadd.f32 %v2328_v5, %v2253_v30 }
 0x940   : > { %v1756_v9 = vadd.f32 %v1751_v8, %v1495_v47 }
 0x942   : > { %v1759_v10 = vsel %vm871_vm2, %v1756_v9, 0.0 }
 0x943   : > { %1760 = vadd.xlane.f32.xlu0 %v1759_v10 }
 0x9d0   : > { %v1761_v11 = vpop.xlane.xlu0 %1760 }
 0x9d1   : > { %v1762_v13 = vmul.f32 0.03125, %v1761_v11 }
 0x9d3   : > { %v1763_v12 = vsub.f32 %v1756_v9, %v1762_v13 }
 0x9d5   : > { %v1764_v14 = vmul.f32 %v1763_v12, %v1763_v12 }
 0x9d7   : > { %v1765_v15 = vsel %vm871_vm2, %v1764_v14, 0.0 }
 0x9d8   : > { %1766 = vadd.xlane.f32.xlu0 %v1765_v15 }
 0x9ee   : > { %1794 = vperm.xlu0 (!%p2272_p1), %2556, %v1791_v26  }
 0xa65   : > { %v1767_v16 = vpop.xlane.xlu0 %1766 }
 0xa66   : > { %v1768_v17 = vmul.f32 0.03125, %v1767_v16 }
 0xa68   : > { %v1769_v20 = vadd.f32 1e-05, %v1768_v17  ;;  %v2679_v17 = vmov (!%p2272_p1), -1.0  }
 0xa6a   : > { %2554 = vrsqrt.f32 %v1769_v20 }
 0xa6b   : > { %2563 = vrcp.f32 (!%p2272_p1), %v1813_v37 }
 0xa6d   : > { %v1795_v40 = vpop.permute.xlu0 (!%p2272_p1), %1794 }
 0xa74   : > { %v2555_v21 = vpop.eup %2554 }
 0xa75   : > { %v1771_v23 = vmul.f32 %v2555_v21, %v1763_v12  ;;  %1790 = sbr.rel (%p2272_p1) target bundleno = 3288 (0xcd8), region = 104  ;;  %v2564_v38 = vpop.eup (!%p2272_p1), %2563 }
 0xa76   : > { %1817 = vperm.xlu0 (!%p2272_p1), %2556, %v2564_v38  }
 0xa77   : > { %v1778_v4 = vmul.f32 %v2270_v22, %v1771_v23 }
 0xa79   : > { %v1785_v25 = vadd.f32 %v2271_v24, %v1778_v4 }
 0xa7b   : > { %1786 = vst.msk [vmem:[#allocation2] sm:$0xff] %vm871_vm2, %v1785_v25  ;;  %v1797_v41 = vmul.f32 (!%p2272_p1), %v1795_v40, %v1785_v25  ;;  %v1919_v25 = vld [vmem:[%s3266_s0] sm:$0x1] (!%p2272_p1) }
 0xa7d   : > { %v1798_v42 = vsel %vm871_vm2, %v1797_v41, 0.0 }
 0xa7e   : > { %v1799_v43 = vrot.slane %v1798_v42, 4 }
 0xa80   : > { %v1800_v44 = vadd.f32 %v1799_v43, %v1798_v42 }
 0xa82   : > { %v1801_v45 = vrot.slane %v1800_v44, 2 }
 0xa84   : > { %v1802_v46 = vadd.f32 %v1801_v45, %v1800_v44 }
 0xa86   : > { %v1803_v47 = vrot.slane %v1802_v46, 1 }
 0xa88   : > { %v1804_v48 = vadd.f32 %v1803_v47, %v1802_v46 }
 0xaf5   : > { %v1818_v49 = vpop.permute.xlu0 %1817 }
 0xaf6   : > { %v1820_v50 = vmul.f32 %v1818_v49, %v1804_v48 }
 0xaf8   : > { %v1821_v51 = vpack.c.bf16 %v1820_v50, %v1820_v50 }
 0xafa   : > { %2409 = vmatmul.mubr.msk.bf16.vlgmr.msra.gmra.mrb[0].mxu0 %vm871_vm2, %v1821_v51 }
 0xbcd   : > { %v1876_v57 = vpop.f32.mrb[0].mxu0 }
 0xbce   : > { %v1877_v58 = vadd.f32 %v1876_v57, %v1826_v56  ;;  %v2410_v59 = vpop.f32.mrb[1].mxu0 }
 0xbcf   : > { %v1879_v60 = vpop.f32.mrb[2].mxu0 }
 0xbd0   : > { %v1884_v61 = vmul.f32 0.70710677, %v1877_v58  ;;  %v2411_v2 = vpop.f32.mrb[3].mxu0  ;;  %v1882_v22 = vmul.f32 0.5, %v1877_v58 }
 0xbd2   : > { %v1887_v62 = vand.u32 2147483647, %v1884_v61  ;;  %vm1885_vm9 = vcmp.ge.f32.partialorder %v1884_v61, 0.0 }
 0xbd3   : > { %v1886_v20 = vsel %vm1885_vm9, 1.0, %v2679_v17 }
 0xbd4   : > { %v1888_v63 = vmul.f32 0.3275911, %v1887_v62  ;;  %v1901_v1 = vsub.f32 0.0, %v1887_v62 }
 0xbd6   : > { %v1889_v0 = vadd.f32 1.0, %v1888_v63  ;;  %v1902_v30 = vmul.f32 %v1901_v1, %v1887_v62 }
 0xbd8   : > { %2565 = vrcp.f32 %v1889_v0  ;;  %v1903_v6 = vmul.f32 1.442695, %v1902_v30 }
 0xbda   : > { %2567 = vpow2.f32 %v1903_v6 }
 0xbe2   : > { %v2566_v3 = vpop.eup %2565 }
 0xbe3   : > { %v1892_v32 = vmul.f32 1.0614054, %v2566_v3 }
 0xbe4   : > { %v2568_v14 = vpop.eup %2567 }
 0xbe5   : > { %v1893_v5 = vadd.f32 -1.4531521, %v1892_v32 }
 0xbe7   : > { %v1894_v7 = vmul.f32 %v2566_v3, %v1893_v5 }
 0xbe9   : > { %v1895_v8 = vadd.f32 1.4214138, %v1894_v7 }
 0xbeb   : > { %v1896_v9 = vmul.f32 %v2566_v3, %v1895_v8 }
 0xbed   : > { %v1897_v10 = vadd.f32 -0.28449672, %v1896_v9 }
 0xbef   : > { %v1898_v11 = vmul.f32 %v2566_v3, %v1897_v10 }
 0xbf1   : > { %v1899_v13 = vadd.f32 0.2548296, %v1898_v11 }
 0xbf3   : > { %v1900_v12 = vmul.f32 %v2566_v3, %v1899_v13 }
 0xbf5   : > { %v1905_v15 = vmul.f32 %v2568_v14, %v1900_v12 }
 0xbf7   : > { %v1906_v16 = vsub.f32 1.0, %v1905_v15 }
 0xbf9   : > { %v1907_v21 = vmul.f32 %v1906_v16, %v1886_v20 }
 0xbfb   : > { %v1908_v23 = vadd.f32 1.0, %v1907_v21 }
 0xbfd   : > { %v1909_v24 = vmul.f32 %v1908_v23, %v1882_v22 }
 0xbff   : > { %v1910_v4 = vpack.c.bf16 %v1909_v24, %v1909_v24 }
 0xc01   : > { %2421 = vmatmul.mubr.msk.bf16.vlgmr.msra.gmra.mrb[0].mxu1 %vm1944_vm10, %v1910_v4 }
 0xcd4   : > { %v1982_v26 = vpop.f32.mrb[0].mxu1 }
 0xcd5   : > { %v1983_v27 = vadd.f32 %v1982_v26, %v1919_v25  ;;  %v2422_v28 = vpop.f32.mrb[1].mxu1 }
 0xcd6   : > { %v1985_v29 = vpop.f32.mrb[2].mxu1 }
 0xcd7   : > { %1989 = vst.msk [vmem:[%s2929_s5] sm:$0x1] %vm1988_vm11, %v1983_v27  ;;  %v2423_v31 = vpop.f32.mrb[3].mxu1 }
 0xcd8 PF: > { %s3267_s28 = sld [smem:[#allocation9_spill]]  ;;  %s3269_s3 = sld [smem:[#allocation30_spill]] }
 0xcd9   : > { %s2003_s15 = sshll.u32 %s2929_s5, 4  ;;  %s3270_s14 = sand.u32 1, %s2639_s30   ;;  %s2004_s15 = int_to_ptr.vmem [resolvable:$true] %s2003_s15 }
 0xcda   : > { %s1991_s17 = scalar_lea.sflag [#allocation4], %s3270_s14  ;;  %s2569_s25 = scalar_lea.vmem %s2004_s15, 16 }
 0xcdb   : > { %p2570_p2 = scmp.ne.s32.totalorder %s2004_s15, %s2569_s25  ;;  %s2680_s22 = smov [#allocation3]  }
 0xcdc   : > { %s2573_s26 = sshll.u32 %s2680_s22, 4  ;;  %s2574_s26 = int_to_ptr.vmem [resolvable:$false] %s2573_s26 }
 0xcdd   : > { %p2571_p4 = pnand %p2570_p2, %p2830_p3  ;;  %s2575_s2 = scalar_lea.vmem %s2574_s26, 32 }
 0xcde   : > { %s2281_s19 = sshll.u32 %s3267_s28, 4  ;;  %p2576_p6 = scmp.lt.s32.totalorder %s2004_s15, %s2574_s26 }
 0xcdf   : > { %s3130_s29 = scalar_lea.hbm %s3269_s3, %s2281_s19  ;;  %p2572_p5 = pneg %p2571_p4 }
 0xce0   : > { %p2577_p7 = scmp.lt.s32.totalorder %s2575_s2, %s2569_s25 }
 0xce2   : > { %p2578_p8 = por %p2577_p7, %p2576_p6 }
 0xce4   : > { %p2579_p10 = pnand %p2578_p8, %p2572_p5 }
 0xce6   : > { %2582 = shalt.err (!%p2579_p10)
}
 0xce7   : > { %s2583_s5 = scalar_lea.hbm %s3130_s29, 16  ;;  %s2587_s21 = scalar_lea.hbm %s3269_s3, 32 }
 0xce8   : > { %p2584_p11 = scmp.ne.s32.totalorder %s3130_s29, %s2583_s5  ;;  %p2588_p0 = scmp.lt.u32.totalorder %s3130_s29, %s3269_s3 }
 0xce9   : > { %p2589_p1 = scmp.lt.u32.totalorder %s2587_s21, %s2583_s5  ;;  %p2591_p4 = scmp.lt.u32.totalorder %s2583_s5, %s3130_s29 }
 0xcea   : > { %p2585_p12 = pnand %p2584_p11, %p2830_p3 }
 0xceb   : > { %p2590_p2 = por %p2589_p1, %p2588_p0 }
 0xcec   : > { %p2586_p13 = pneg %p2585_p12 }
 0xced   : > { %p2592_p5 = por %p2591_p4, %p2590_p2 }
 0xcef   : > { %p2593_p6 = pnand %p2592_p5, %p2586_p13 }
 0xcf1   : > { %2596 = shalt.err (!%p2593_p6)
}
 0xcf2   : > { %2424 = dma.vmem_to_hbm [thread:$0]  (%p2830_p3), %s2004_s15, 16, %s3130_s29, %s1991_s17  }
 0xcf3 PF: > { %s3271_s19 = sld [smem:[#allocation12_spill]]  ;;  %s3272_s1 = sld [smem:[#allocation6_spill]] }
 0xcf9   : > { %p2430_p7 = scmp.ge.s32.totalorder %s3271_s19, 2  ;;  %s2015_s14 = sand.u32 1, %s3272_s1  }
 0xcfa   : > { %s2016_s25 = scalar_lea.sflag [#allocation4], %s2015_s14 }
 0xcfb   : > { %p2427_p8 = pnand %p2430_p7, %p2840_p9 }
 0xcfd   : > { %2630 = dma.done.wait (!%p2427_p8), %s2016_s25, 16  }
 0xcfe   : > { %2632 = vsyncadd (!%p2427_p8), %s2016_s25, 4294967280  ;;  %s32_s23 = sadd.s32 1, %s3271_s19   ;;  %s3274_s22 = sld [smem:[#allocation7_spill]] }
 0xcff   : > { %p29_p10 = scmp.ge.s32.totalorder %s32_s23, 6   ;;  %s3275_s20 = sld [smem:[#allocation17_spill]] }
 0xd00   : > { %s3276_s21 = sld [smem:[#allocation10_spill]]  ;;  %s3277_s1 = sld [smem:[#allocation11_spill]] }
 0xd01   : > { %s3278_s29 = sld [smem:[#allocation13_spill]]  ;;  %s3279_s2 = sld [smem:[#allocation15_spill]] }
 0xd02   : > { %s3280_s0 = smov %s2639_s30  ;;  %31 = sbr.rel (!%p29_p10) target bundleno = 17 (0x11), region = 181 }
 0xd04   : > { %s3281_s30 = smov %s3274_s22 }
 0xd07   : > { %s3282_s22 = smov %s3278_s29 }
 0xd09   :  { %2020 = vsyncpa [#allocation4], 1 }
 0xd0a   :  { %2022 = vsyncpa [#allocation4 + $0x1], 1 }

</bundles_post_ra>
